<compile_context>
chip_gen: v6e
topology: v6e:2x2x1
jax: 0.10.0
libtpu: 0.0.40
codegen_flags: <defaults>
</compile_context>

<pallas_src>
import functools

import jax
import jax.numpy as jnp
from jax.experimental import pallas as pl
from jax.experimental.pallas import tpu as pltpu


OUT_PAD = 128           # lane-dense padded output width (validity + labels + zero padding)
H1 = 1024               # fused layer-1 width  (512 + 512)
H1_HALF = 512           # per-head layer-1 width
H2_HALF = 256           # per-head layer-2 width

_MIB = 1024 * 1024
_VMEM_SOFT_CAP = 48 * _MIB      # keep actual VMEM use well under v7x's 64 MiB physical


def _round_up(x, m):
    return ((x + m - 1) // m) * m


def _leaky_relu(x, slope=0.2):
    return jnp.where(x > 0, x, slope * x)


# ----------------------------------------------------------------------------- kernel


def discriminator_kernel(x_ref, w1_ref, b1_ref,
                         w2a_ref, b2a_ref, w2b_ref, b2b_ref,
                         w3a_ref, w3b_ref, b3_ref, out_ref):
    """Fused two-head MLP; 5 MXU matmuls, lane-dense (TB, 128) f32 output slab."""
    # Cast to bf16 on the VPU after the tile lands in VMEM (avoids a wrapper-side
    # HBM cast pass); all matmuls accumulate in f32 on the MXU.
    x = x_ref[...].astype(jnp.bfloat16)                                   # (TB, D)

    # Layer 1: both heads share x -> one (D, 1024) matmul, result is [h1a | h1b].
    h1 = jnp.dot(x, w1_ref[...], preferred_element_type=jnp.float32) + b1_ref[...]
    h1 = _leaky_relu(h1).astype(jnp.bfloat16)                             # (TB, 1024)

    # Layer 2: two lane-aligned half matmuls (the 512 split is a free tile-aligned slice),
    # no structural-zero MXU work unlike a block-diagonal (1024,512) matmul.
    h2a = _leaky_relu(
        jnp.dot(h1[:, :H1_HALF], w2a_ref[...], preferred_element_type=jnp.float32)
        + b2a_ref[...]).astype(jnp.bfloat16)                              # (TB, 256)
    h2b = _leaky_relu(
        jnp.dot(h1[:, H1_HALF:], w2b_ref[...], preferred_element_type=jnp.float32)
        + b2b_ref[...]).astype(jnp.bfloat16)                              # (TB, 256)

    # Layer 3: packed & lane-padded; col 0 = validity, cols 1..n_classes = labels, rest 0.
    out_ref[...] = (
        jnp.dot(h2a, w3a_ref[...], preferred_element_type=jnp.float32)
        + jnp.dot(h2b, w3b_ref[...], preferred_element_type=jnp.float32)
        + b3_ref[...])                                                    # (TB, 128) f32


# ----------------------------------------------------------------------------- pallas_call wrapper


@functools.partial(
    jax.jit,
    static_argnames=("block_b", "single_buffer_weights", "vmem_limit_bytes"))
def _pallas_forward(x, w1, b1, w2a, b2a, w2b, b2b, w3a, w3b, b3,
                    *, block_b, single_buffer_weights, vmem_limit_bytes):
    B_rows, D = x.shape
    grid = (pl.cdiv(B_rows, block_b),)

    if single_buffer_weights:
        # Weights/biases have constant index_maps -> resident in VMEM; single-buffer
        # them to halve their VMEM footprint (matters for large D on v7x).
        def wspec(shape):
            return pl.BlockSpec(shape, lambda i: (0, 0), pipeline_mode=pl.Buffered(1))
    else:
        def wspec(shape):
            return pl.BlockSpec(shape, lambda i: (0, 0))

    return pl.pallas_call(
        discriminator_kernel,
        out_shape=jax.ShapeDtypeStruct((B_rows, OUT_PAD), jnp.float32),
        grid=grid,
        in_specs=[
            pl.BlockSpec((block_b, D), lambda i: (i, 0)),      # x: batch-tiled, streamed
            wspec((D, H1)),                                    # fused W1 (resident)
            wspec((1, H1)),
            wspec((H1_HALF, H2_HALF)),                         # W2 head-a (resident)
            wspec((1, H2_HALF)),
            wspec((H1_HALF, H2_HALF)),                         # W2 head-b (resident)
            wspec((1, H2_HALF)),
            wspec((H2_HALF, OUT_PAD)),                         # packed W3 head-a (resident)
            wspec((H2_HALF, OUT_PAD)),                         # packed W3 head-b (resident)
            wspec((1, OUT_PAD)),
        ],
        out_specs=pl.BlockSpec((block_b, OUT_PAD), lambda i: (i, 0)),
        compiler_params=pltpu.CompilerParams(
            dimension_semantics=("parallel",),      # v7x: shard batch tiles across both TCs
            vmem_limit_bytes=vmem_limit_bytes,
        ),
    )(x, w1, b1, w2a, b2a, w2b, b2b, w3a, w3b, b3)


def _vmem_bytes(block_b, D, x_itemsize, weight_bufs):
    """Approximate VMEM footprint of the kernel (bytes)."""
    x_tile = 2 * block_b * D * x_itemsize            # double-buffered input tile
    out_tile = 2 * block_b * OUT_PAD * 4             # double-buffered f32 output tile
    weights = weight_bufs * (
        D * H1 * 2 + H1 * 4                                      # W1 bf16 + b1 f32
        + 2 * (H1_HALF * H2_HALF * 2 + H2_HALF * 4)              # W2a/W2b + biases
        + 2 * H2_HALF * OUT_PAD * 2 + OUT_PAD * 4)               # W3a/W3b + b3
    return x_tile + out_tile + weights


def _choose_block_b(B, D, x_itemsize, max_block=512):
    """Batch tile: multiple of 8, big enough to amortize per-step overhead, small enough
    to keep >=2 grid steps (v7x megacore) and to stay under the VMEM soft cap."""
    if B <= 16:
        block_b = _round_up(max(B, 1), 8)
    else:
        block_b = max(8, min(_round_up(max_block, 8), _round_up(pl.cdiv(B, 2), 8)))
    # Shrink until the (mostly weight-resident) VMEM budget fits v7x's 64 MiB with headroom.
    while block_b > 8 and 1.25 * _vmem_bytes(block_b, D, x_itemsize, 1) > _VMEM_SOFT_CAP:
        block_b = max(8, _round_up(block_b // 2, 8))
    return block_b


def discriminator_forward(codes, packed_params, *, n_classes, max_block_b=512):
    """codes: (B, seq_length, feature_dim) or any (B, ...) shape; flattened like torch .view(B,-1)."""
    B = codes.shape[0]
    x = codes.reshape(B, -1)                    # no cast here; kernel casts to bf16 on the VPU
    D = x.shape[1]
    itemsize = jnp.dtype(x.dtype).itemsize

    block_b = _choose_block_b(B, D, itemsize, max_block_b)

    # Only pad when the batch is smaller than one tile (trivially cheap); otherwise the
    # ragged last tile is handled by the pipeline's masked edge reads/writes.
    B_rows = B
    if B < block_b:
        x = jnp.pad(x, ((0, block_b - B), (0, 0)))
        B_rows = block_b

    # Explicit VMEM budget (computed with double-buffered weights so the fallback path
    # also fits), with headroom, never below the 32 MiB default scoped limit.
    vmem_limit = int(min(max(1.25 * _vmem_bytes(block_b, D, itemsize, 2) + _MIB,
                             32 * _MIB), 100 * _MIB))

    args = (x, *packed_params)
    try:
        out = _pallas_forward(*args, block_b=block_b,
                              single_buffer_weights=True,
                              vmem_limit_bytes=vmem_limit)
    except Exception:
        # Fallback if pipeline_mode=pl.Buffered(1) is not supported by this jax build.
        out = _pallas_forward(*args, block_b=block_b,
                              single_buffer_weights=False,
                              vmem_limit_bytes=vmem_limit)

    validity = out[:B, 0:1]
    gen_labels = out[:B, 1:1 + n_classes]
    return validity, gen_labels


# ----------------------------------------------------------------------------- params


def init_linear(key, fan_in, fan_out):
    """PyTorch nn.Linear default init: U(-1/sqrt(fan_in), 1/sqrt(fan_in)).
    Weight stored transposed as (in, out); bias as (1, out); both f32."""
    kw, kb = jax.random.split(key)
    bound = 1.0 / jnp.sqrt(jnp.float32(fan_in))
    w = jax.random.uniform(kw, (fan_in, fan_out), jnp.float32, -bound, bound)
    b = jax.random.uniform(kb, (1, fan_out), jnp.float32, -bound, bound)
    return w, b


def init_discriminator(key, n_classes, feature_dim, seq_length):
    """Raw (un-fused) parameters mirroring the PyTorch module (weights as (in, out))."""
    D = feature_dim * seq_length
    keys = jax.random.split(key, 6)
    # model1: D -> 512 -> 256 -> 1
    w1a, b1a = init_linear(keys[0], D, 512)
    w2a, b2a = init_linear(keys[1], 512, 256)
    w3a, b3a = init_linear(keys[2], 256, 1)
    # model2: D -> 512 -> 256 -> n_classes
    w1b, b1b = init_linear(keys[3], D, 512)
    w2b, b2b = init_linear(keys[4], 512, 256)
    w3b, b3b = init_linear(keys[5], 256, n_classes)
    return (w1a, b1a, w2a, b2a, w3a, b3a,
            w1b, b1b, w2b, b2b, w3b, b3b)


def pack_params(raw_params, n_classes):
    """Fuse the two heads (done once, outside the kernel): concat layer-1 weights, keep
    layer-2 halves separate (lane-aligned split in-kernel), pack layer-3 into lane-dense
    (256,128) blocks. Weights bf16, biases f32."""
    assert n_classes <= OUT_PAD - 1, "n_classes must fit in the 128-lane padded output"
    (w1a, b1a, w2a, b2a, w3a, b3a,
     w1b, b1b, w2b, b2b, w3b, b3b) = raw_params

    # Layer 1: shared input -> simple concat along the output dim.
    w1 = jnp.concatenate([w1a, w1b], axis=1).astype(jnp.bfloat16)          # (D, 1024)
    b1 = jnp.concatenate([b1a, b1b], axis=1).astype(jnp.float32)           # (1, 1024)

    # Layer 2: keep the two heads separate (kernel slices h1 at the lane-aligned 512 boundary).
    w2a_p = w2a.astype(jnp.bfloat16)                                       # (512, 256)
    w2b_p = w2b.astype(jnp.bfloat16)                                       # (512, 256)
    b2a_p = b2a.astype(jnp.float32)
    b2b_p = b2b.astype(jnp.float32)

    # Layer 3: packed lane-dense blocks; validity -> col 0, labels -> cols 1..n_classes.
    w3a_p = jnp.zeros((H2_HALF, OUT_PAD), jnp.float32).at[:, 0:1].set(w3a).astype(jnp.bfloat16)
    w3b_p = jnp.zeros((H2_HALF, OUT_PAD), jnp.float32).at[:, 1:1 + n_classes].set(w3b).astype(jnp.bfloat16)
    b3 = jnp.zeros((1, OUT_PAD), jnp.float32)
    b3 = b3.at[:, 0:1].set(b3a).at[:, 1:1 + n_classes].set(b3b)

    return (w1, b1, w2a_p, b2a_p, w2b_p, b2b_p, w3a_p, w3b_p, b3)


def reference_forward(codes, raw_params):
    """Pure-JAX f32 reference mirroring the PyTorch forward."""
    (w1a, b1a, w2a, b2a, w3a, b3a,
     w1b, b1b, w2b, b2b, w3b, b3b) = raw_params
    x = codes.reshape(codes.shape[0], -1).astype(jnp.float32)

    def mlp(w1, b1, w2, b2, w3, b3):
        h = _leaky_relu(x @ w1 + b1)
        h = _leaky_relu(h @ w2 + b2)
        return h @ w3 + b3

    return (mlp(w1a, b1a, w2a, b2a, w3a, b3a),
            mlp(w1b, b1b, w2b, b2b, w3b, b3b))


if __name__ == "__main__":
    # Small, module-consistent shapes.
    batch = 2
    n_classes = 5
    feature_dim = 4
    seq_length = 8

    key = jax.random.PRNGKey(0)
    k_params, k_codes = jax.random.split(key)

    raw_params = init_discriminator(k_params, n_classes, feature_dim, seq_length)
    packed = pack_params(raw_params, n_classes)
    codes = jax.random.normal(k_codes, (batch, seq_length, feature_dim), jnp.float32)

    validity, gen_labels = discriminator_forward(codes, packed, n_classes=n_classes)
    validity, gen_labels = jax.block_until_ready((validity, gen_labels))

    # Sanity check against the pure-f32 reference (kernel runs bf16 weights / f32 accumulate).
    ref_v, ref_l = reference_forward(codes, raw_params)
    assert validity.shape == (batch, 1)
    assert gen_labels.shape == (batch, n_classes)
    assert jnp.allclose(validity, ref_v, atol=5e-2, rtol=5e-2)
    assert jnp.allclose(gen_labels, ref_l, atol=5e-2, rtol=5e-2)

    print("KERNEL_OK")
</pallas_src>

<mosaic_0001>
module attributes {stable_mosaic.version = 11 : i64} {
  func.func @discriminator_kernel(%arg0: i32, %arg1: memref<8x32xf32, #tpu.memory_space<vmem>>, %arg2: memref<32x1024xbf16, #tpu.memory_space<vmem>>, %arg3: memref<1x1024xf32, #tpu.memory_space<vmem>>, %arg4: memref<512x256xbf16, #tpu.memory_space<vmem>>, %arg5: memref<1x256xf32, #tpu.memory_space<vmem>>, %arg6: memref<512x256xbf16, #tpu.memory_space<vmem>>, %arg7: memref<1x256xf32, #tpu.memory_space<vmem>>, %arg8: memref<256x128xbf16, #tpu.memory_space<vmem>>, %arg9: memref<256x128xbf16, #tpu.memory_space<vmem>>, %arg10: memref<1x128xf32, #tpu.memory_space<vmem>>, %arg11: memref<8x128xf32, #tpu.memory_space<vmem>>) attributes {dimension_semantics = [#tpu.dimension_semantics<parallel>], iteration_bounds = array<i64: 1>, scalar_prefetch = 0 : i64, scratch_operands = 0 : i64, tpu.core_type = #tpu.core_type<tc>, window_params = [{transform_indices = @transform_0, window_bounds = array<i64: 8, 32>}, {pipeline_mode = #tpu.pipeline_mode<synchronous>, transform_indices = @transform_1, window_bounds = array<i64: 32, 1024>}, {pipeline_mode = #tpu.pipeline_mode<synchronous>, transform_indices = @transform_2, window_bounds = array<i64: 1, 1024>}, {pipeline_mode = #tpu.pipeline_mode<synchronous>, transform_indices = @transform_3, window_bounds = array<i64: 512, 256>}, {pipeline_mode = #tpu.pipeline_mode<synchronous>, transform_indices = @transform_4, window_bounds = array<i64: 1, 256>}, {pipeline_mode = #tpu.pipeline_mode<synchronous>, transform_indices = @transform_5, window_bounds = array<i64: 512, 256>}, {pipeline_mode = #tpu.pipeline_mode<synchronous>, transform_indices = @transform_6, window_bounds = array<i64: 1, 256>}, {pipeline_mode = #tpu.pipeline_mode<synchronous>, transform_indices = @transform_7, window_bounds = array<i64: 256, 128>}, {pipeline_mode = #tpu.pipeline_mode<synchronous>, transform_indices = @transform_8, window_bounds = array<i64: 256, 128>}, {pipeline_mode = #tpu.pipeline_mode<synchronous>, transform_indices = @transform_9, window_bounds = array<i64: 1, 128>}, {transform_indices = @transform_10, window_bounds = array<i64: 8, 128>}]} {
    %c0 = arith.constant 0 : index
    %c0_0 = arith.constant 0 : index
    %0 = vector.load %arg1[%c0, %c0_0] : memref<8x32xf32, #tpu.memory_space<vmem>>, vector<8x32xf32>
    %1 = arith.truncf %0 : vector<8x32xf32> to vector<8x32xbf16>
    %c0_1 = arith.constant 0 : index
    %c0_2 = arith.constant 0 : index
    %2 = vector.load %arg2[%c0_1, %c0_2] : memref<32x1024xbf16, #tpu.memory_space<vmem>>, vector<32x1024xbf16>
    %cst = arith.constant dense<0.000000e+00> : vector<8x1024xf32>
    %3 = tpu.matmul %1, %2, %cst {dimension_numbers = #tpu.dot_dimension_numbers<[1], [0], [0], [1], [0, 0, 1, 1], [], []>} : vector<8x32xbf16>, vector<32x1024xbf16>, vector<8x1024xf32> -> vector<8x1024xf32>
    %c0_3 = arith.constant 0 : index
    %c0_4 = arith.constant 0 : index
    %4 = vector.load %arg3[%c0_3, %c0_4] : memref<1x1024xf32, #tpu.memory_space<vmem>>, vector<1x1024xf32>
    %5 = vector.broadcast %4 : vector<1x1024xf32> to vector<8x1024xf32>
    %6 = arith.addf %3, %5 : vector<8x1024xf32>
    %cst_5 = arith.constant 0.000000e+00 : f32
    %7 = vector.broadcast %cst_5 : f32 to vector<8x1024xf32>
    %8 = arith.cmpf ogt, %6, %7 : vector<8x1024xf32>
    %cst_6 = arith.constant 2.000000e-01 : f32
    %9 = vector.broadcast %cst_6 : f32 to vector<8x1024xf32>
    %10 = arith.mulf %9, %6 : vector<8x1024xf32>
    %11 = arith.select %8, %6, %10 : vector<8x1024xi1>, vector<8x1024xf32>
    %12 = arith.truncf %11 : vector<8x1024xf32> to vector<8x1024xbf16>
    %13 = vector.extract_strided_slice %12 {offsets = [0, 0], sizes = [8, 512], strides = [1, 1]} : vector<8x1024xbf16> to vector<8x512xbf16>
    %c0_7 = arith.constant 0 : index
    %c0_8 = arith.constant 0 : index
    %14 = vector.load %arg4[%c0_7, %c0_8] : memref<512x256xbf16, #tpu.memory_space<vmem>>, vector<512x256xbf16>
    %cst_9 = arith.constant dense<0.000000e+00> : vector<8x256xf32>
    %15 = tpu.matmul %13, %14, %cst_9 {dimension_numbers = #tpu.dot_dimension_numbers<[1], [0], [0], [1], [0, 0, 1, 1], [], []>} : vector<8x512xbf16>, vector<512x256xbf16>, vector<8x256xf32> -> vector<8x256xf32>
    %c0_10 = arith.constant 0 : index
    %c0_11 = arith.constant 0 : index
    %16 = vector.load %arg5[%c0_10, %c0_11] : memref<1x256xf32, #tpu.memory_space<vmem>>, vector<1x256xf32>
    %17 = vector.broadcast %16 : vector<1x256xf32> to vector<8x256xf32>
    %18 = arith.addf %15, %17 : vector<8x256xf32>
    %cst_12 = arith.constant 0.000000e+00 : f32
    %19 = vector.broadcast %cst_12 : f32 to vector<8x256xf32>
    %20 = arith.cmpf ogt, %18, %19 : vector<8x256xf32>
    %cst_13 = arith.constant 2.000000e-01 : f32
    %21 = vector.broadcast %cst_13 : f32 to vector<8x256xf32>
    %22 = arith.mulf %21, %18 : vector<8x256xf32>
    %23 = arith.select %20, %18, %22 : vector<8x256xi1>, vector<8x256xf32>
    %24 = arith.truncf %23 : vector<8x256xf32> to vector<8x256xbf16>
    %25 = vector.extract_strided_slice %12 {offsets = [0, 512], sizes = [8, 512], strides = [1, 1]} : vector<8x1024xbf16> to vector<8x512xbf16>
    %c0_14 = arith.constant 0 : index
    %c0_15 = arith.constant 0 : index
    %26 = vector.load %arg6[%c0_14, %c0_15] : memref<512x256xbf16, #tpu.memory_space<vmem>>, vector<512x256xbf16>
    %cst_16 = arith.constant dense<0.000000e+00> : vector<8x256xf32>
    %27 = tpu.matmul %25, %26, %cst_16 {dimension_numbers = #tpu.dot_dimension_numbers<[1], [0], [0], [1], [0, 0, 1, 1], [], []>} : vector<8x512xbf16>, vector<512x256xbf16>, vector<8x256xf32> -> vector<8x256xf32>
    %c0_17 = arith.constant 0 : index
    %c0_18 = arith.constant 0 : index
    %28 = vector.load %arg7[%c0_17, %c0_18] : memref<1x256xf32, #tpu.memory_space<vmem>>, vector<1x256xf32>
    %29 = vector.broadcast %28 : vector<1x256xf32> to vector<8x256xf32>
    %30 = arith.addf %27, %29 : vector<8x256xf32>
    %cst_19 = arith.constant 0.000000e+00 : f32
    %31 = vector.broadcast %cst_19 : f32 to vector<8x256xf32>
    %32 = arith.cmpf ogt, %30, %31 : vector<8x256xf32>
    %cst_20 = arith.constant 2.000000e-01 : f32
    %33 = vector.broadcast %cst_20 : f32 to vector<8x256xf32>
    %34 = arith.mulf %33, %30 : vector<8x256xf32>
    %35 = arith.select %32, %30, %34 : vector<8x256xi1>, vector<8x256xf32>
    %36 = arith.truncf %35 : vector<8x256xf32> to vector<8x256xbf16>
    %c0_21 = arith.constant 0 : index
    %c0_22 = arith.constant 0 : index
    %37 = vector.load %arg8[%c0_21, %c0_22] : memref<256x128xbf16, #tpu.memory_space<vmem>>, vector<256x128xbf16>
    %cst_23 = arith.constant dense<0.000000e+00> : vector<8x128xf32>
    %38 = tpu.matmul %24, %37, %cst_23 {dimension_numbers = #tpu.dot_dimension_numbers<[1], [0], [0], [1], [0, 0, 1, 1], [], []>} : vector<8x256xbf16>, vector<256x128xbf16>, vector<8x128xf32> -> vector<8x128xf32>
    %c0_24 = arith.constant 0 : index
    %c0_25 = arith.constant 0 : index
    %39 = vector.load %arg9[%c0_24, %c0_25] : memref<256x128xbf16, #tpu.memory_space<vmem>>, vector<256x128xbf16>
    %cst_26 = arith.constant dense<0.000000e+00> : vector<8x128xf32>
    %40 = tpu.matmul %36, %39, %cst_26 {dimension_numbers = #tpu.dot_dimension_numbers<[1], [0], [0], [1], [0, 0, 1, 1], [], []>} : vector<8x256xbf16>, vector<256x128xbf16>, vector<8x128xf32> -> vector<8x128xf32>
    %41 = arith.addf %38, %40 : vector<8x128xf32>
    %c0_27 = arith.constant 0 : index
    %c0_28 = arith.constant 0 : index
    %42 = vector.load %arg10[%c0_27, %c0_28] : memref<1x128xf32, #tpu.memory_space<vmem>>, vector<1x128xf32>
    %43 = vector.broadcast %42 : vector<1x128xf32> to vector<8x128xf32>
    %44 = arith.addf %41, %43 : vector<8x128xf32>
    %c0_29 = arith.constant 0 : index
    %c0_30 = arith.constant 0 : index
    %45 = vector.load %arg11[%c0_29, %c0_30] : memref<8x128xf32, #tpu.memory_space<vmem>>, vector<8x128xf32>
    tpu.vector_store %arg11[%c0_29, %c0_30], %44 {strides = array<i32>} : memref<8x128xf32, #tpu.memory_space<vmem>>, vector<8x128xf32>,
    return
  }
  func.func @transform_0(%arg0: i32) -> (i32, i32) {
    %c0_i32 = arith.constant 0 : i32
    %c0_i32_0 = arith.constant 0 : i32
    return %arg0, %c0_i32 : i32, i32
  }
  func.func @transform_1(%arg0: i32) -> (i32, i32) {
    %c0_i32 = arith.constant 0 : i32
    %c0_i32_0 = arith.constant 0 : i32
    %c0_i32_1 = arith.constant 0 : i32
    return %c0_i32, %c0_i32_0 : i32, i32
  }
  func.func @transform_2(%arg0: i32) -> (i32, i32) {
    %c0_i32 = arith.constant 0 : i32
    %c0_i32_0 = arith.constant 0 : i32
    %c0_i32_1 = arith.constant 0 : i32
    return %c0_i32, %c0_i32_0 : i32, i32
  }
  func.func @transform_3(%arg0: i32) -> (i32, i32) {
    %c0_i32 = arith.constant 0 : i32
    %c0_i32_0 = arith.constant 0 : i32
    %c0_i32_1 = arith.constant 0 : i32
    return %c0_i32, %c0_i32_0 : i32, i32
  }
  func.func @transform_4(%arg0: i32) -> (i32, i32) {
    %c0_i32 = arith.constant 0 : i32
    %c0_i32_0 = arith.constant 0 : i32
    %c0_i32_1 = arith.constant 0 : i32
    return %c0_i32, %c0_i32_0 : i32, i32
  }
  func.func @transform_5(%arg0: i32) -> (i32, i32) {
    %c0_i32 = arith.constant 0 : i32
    %c0_i32_0 = arith.constant 0 : i32
    %c0_i32_1 = arith.constant 0 : i32
    return %c0_i32, %c0_i32_0 : i32, i32
  }
  func.func @transform_6(%arg0: i32) -> (i32, i32) {
    %c0_i32 = arith.constant 0 : i32
    %c0_i32_0 = arith.constant 0 : i32
    %c0_i32_1 = arith.constant 0 : i32
    return %c0_i32, %c0_i32_0 : i32, i32
  }
  func.func @transform_7(%arg0: i32) -> (i32, i32) {
    %c0_i32 = arith.constant 0 : i32
    %c0_i32_0 = arith.constant 0 : i32
    %c0_i32_1 = arith.constant 0 : i32
    return %c0_i32, %c0_i32_0 : i32, i32
  }
  func.func @transform_8(%arg0: i32) -> (i32, i32) {
    %c0_i32 = arith.constant 0 : i32
    %c0_i32_0 = arith.constant 0 : i32
    %c0_i32_1 = arith.constant 0 : i32
    return %c0_i32, %c0_i32_0 : i32, i32
  }
  func.func @transform_9(%arg0: i32) -> (i32, i32) {
    %c0_i32 = arith.constant 0 : i32
    %c0_i32_0 = arith.constant 0 : i32
    %c0_i32_1 = arith.constant 0 : i32
    return %c0_i32, %c0_i32_0 : i32, i32
  }
  func.func @transform_10(%arg0: i32) -> (i32, i32) {
    %c0_i32 = arith.constant 0 : i32
    %c0_i32_0 = arith.constant 0 : i32
    return %arg0, %c0_i32 : i32, i32
  }
}

module attributes {stable_mosaic.version = 11 : i64} {
  func.func @discriminator_kernel(%arg0: i32, %arg1: memref<8x32xf32, #tpu.memory_space<vmem>>, %arg2: memref<32x1024xbf16, #tpu.memory_space<vmem>>, %arg3: memref<1x1024xf32, #tpu.memory_space<vmem>>, %arg4: memref<512x256xbf16, #tpu.memory_space<vmem>>, %arg5: memref<1x256xf32, #tpu.memory_space<vmem>>, %arg6: memref<512x256xbf16, #tpu.memory_space<vmem>>, %arg7: memref<1x256xf32, #tpu.memory_space<vmem>>, %arg8: memref<256x128xbf16, #tpu.memory_space<vmem>>, %arg9: memref<256x128xbf16, #tpu.memory_space<vmem>>, %arg10: memref<1x128xf32, #tpu.memory_space<vmem>>, %arg11: memref<8x128xf32, #tpu.memory_space<vmem>>) attributes {dimension_semantics = [#tpu.dimension_semantics<parallel>], iteration_bounds = array<i64: 1>, scalar_prefetch = 0 : i64, scratch_operands = 0 : i64, tpu.core_type = #tpu.core_type<tc>, window_params = [{transform_indices = @transform_0, window_bounds = array<i64: 8, 32>}, {pipeline_mode = #tpu.pipeline_mode<synchronous>, transform_indices = @transform_1, window_bounds = array<i64: 32, 1024>}, {pipeline_mode = #tpu.pipeline_mode<synchronous>, transform_indices = @transform_2, window_bounds = array<i64: 1, 1024>}, {pipeline_mode = #tpu.pipeline_mode<synchronous>, transform_indices = @transform_3, window_bounds = array<i64: 512, 256>}, {pipeline_mode = #tpu.pipeline_mode<synchronous>, transform_indices = @transform_4, window_bounds = array<i64: 1, 256>}, {pipeline_mode = #tpu.pipeline_mode<synchronous>, transform_indices = @transform_5, window_bounds = array<i64: 512, 256>}, {pipeline_mode = #tpu.pipeline_mode<synchronous>, transform_indices = @transform_6, window_bounds = array<i64: 1, 256>}, {pipeline_mode = #tpu.pipeline_mode<synchronous>, transform_indices = @transform_7, window_bounds = array<i64: 256, 128>}, {pipeline_mode = #tpu.pipeline_mode<synchronous>, transform_indices = @transform_8, window_bounds = array<i64: 256, 128>}, {pipeline_mode = #tpu.pipeline_mode<synchronous>, transform_indices = @transform_9, window_bounds = array<i64: 1, 128>}, {transform_indices = @transform_10, window_bounds = array<i64: 8, 128>}]} {
    %c0 = arith.constant 0 : index
    %c0_0 = arith.constant 0 : index
    %0 = vector.load %arg1[%c0, %c0_0] : memref<8x32xf32, #tpu.memory_space<vmem>>, vector<8x32xf32>
    %1 = arith.truncf %0 : vector<8x32xf32> to vector<8x32xbf16>
    %c0_1 = arith.constant 0 : index
    %c0_2 = arith.constant 0 : index
    %2 = vector.load %arg2[%c0_1, %c0_2] : memref<32x1024xbf16, #tpu.memory_space<vmem>>, vector<32x1024xbf16>
    %cst = arith.constant dense<0.000000e+00> : vector<8x1024xf32>
    %3 = tpu.matmul %1, %2, %cst {dimension_numbers = #tpu.dot_dimension_numbers<[1], [0], [0], [1], [0, 0, 1, 1], [], []>} : vector<8x32xbf16>, vector<32x1024xbf16>, vector<8x1024xf32> -> vector<8x1024xf32>
    %c0_3 = arith.constant 0 : index
    %c0_4 = arith.constant 0 : index
    %4 = vector.load %arg3[%c0_3, %c0_4] : memref<1x1024xf32, #tpu.memory_space<vmem>>, vector<1x1024xf32>
    %5 = vector.broadcast %4 : vector<1x1024xf32> to vector<8x1024xf32>
    %6 = arith.addf %3, %5 : vector<8x1024xf32>
    %cst_5 = arith.constant 0.000000e+00 : f32
    %7 = vector.broadcast %cst_5 : f32 to vector<8x1024xf32>
    %8 = arith.cmpf ogt, %6, %7 : vector<8x1024xf32>
    %cst_6 = arith.constant 2.000000e-01 : f32
    %9 = vector.broadcast %cst_6 : f32 to vector<8x1024xf32>
    %10 = arith.mulf %9, %6 : vector<8x1024xf32>
    %11 = arith.select %8, %6, %10 : vector<8x1024xi1>, vector<8x1024xf32>
    %12 = arith.truncf %11 : vector<8x1024xf32> to vector<8x1024xbf16>
    %13 = vector.extract_strided_slice %12 {offsets = [0, 0], sizes = [8, 512], strides = [1, 1]} : vector<8x1024xbf16> to vector<8x512xbf16>
    %c0_7 = arith.constant 0 : index
    %c0_8 = arith.constant 0 : index
    %14 = vector.load %arg4[%c0_7, %c0_8] : memref<512x256xbf16, #tpu.memory_space<vmem>>, vector<512x256xbf16>
    %cst_9 = arith.constant dense<0.000000e+00> : vector<8x256xf32>
    %15 = tpu.matmul %13, %14, %cst_9 {dimension_numbers = #tpu.dot_dimension_numbers<[1], [0], [0], [1], [0, 0, 1, 1], [], []>} : vector<8x512xbf16>, vector<512x256xbf16>, vector<8x256xf32> -> vector<8x256xf32>
    %c0_10 = arith.constant 0 : index
    %c0_11 = arith.constant 0 : index
    %16 = vector.load %arg5[%c0_10, %c0_11] : memref<1x256xf32, #tpu.memory_space<vmem>>, vector<1x256xf32>
    %17 = vector.broadcast %16 : vector<1x256xf32> to vector<8x256xf32>
    %18 = arith.addf %15, %17 : vector<8x256xf32>
    %cst_12 = arith.constant 0.000000e+00 : f32
    %19 = vector.broadcast %cst_12 : f32 to vector<8x256xf32>
    %20 = arith.cmpf ogt, %18, %19 : vector<8x256xf32>
    %cst_13 = arith.constant 2.000000e-01 : f32
    %21 = vector.broadcast %cst_13 : f32 to vector<8x256xf32>
    %22 = arith.mulf %21, %18 : vector<8x256xf32>
    %23 = arith.select %20, %18, %22 : vector<8x256xi1>, vector<8x256xf32>
    %24 = arith.truncf %23 : vector<8x256xf32> to vector<8x256xbf16>
    %25 = vector.extract_strided_slice %12 {offsets = [0, 512], sizes = [8, 512], strides = [1, 1]} : vector<8x1024xbf16> to vector<8x512xbf16>
    %c0_14 = arith.constant 0 : index
    %c0_15 = arith.constant 0 : index
    %26 = vector.load %arg6[%c0_14, %c0_15] : memref<512x256xbf16, #tpu.memory_space<vmem>>, vector<512x256xbf16>
    %cst_16 = arith.constant dense<0.000000e+00> : vector<8x256xf32>
    %27 = tpu.matmul %25, %26, %cst_16 {dimension_numbers = #tpu.dot_dimension_numbers<[1], [0], [0], [1], [0, 0, 1, 1], [], []>} : vector<8x512xbf16>, vector<512x256xbf16>, vector<8x256xf32> -> vector<8x256xf32>
    %c0_17 = arith.constant 0 : index
    %c0_18 = arith.constant 0 : index
    %28 = vector.load %arg7[%c0_17, %c0_18] : memref<1x256xf32, #tpu.memory_space<vmem>>, vector<1x256xf32>
    %29 = vector.broadcast %28 : vector<1x256xf32> to vector<8x256xf32>
    %30 = arith.addf %27, %29 : vector<8x256xf32>
    %cst_19 = arith.constant 0.000000e+00 : f32
    %31 = vector.broadcast %cst_19 : f32 to vector<8x256xf32>
    %32 = arith.cmpf ogt, %30, %31 : vector<8x256xf32>
    %cst_20 = arith.constant 2.000000e-01 : f32
    %33 = vector.broadcast %cst_20 : f32 to vector<8x256xf32>
    %34 = arith.mulf %33, %30 : vector<8x256xf32>
    %35 = arith.select %32, %30, %34 : vector<8x256xi1>, vector<8x256xf32>
    %36 = arith.truncf %35 : vector<8x256xf32> to vector<8x256xbf16>
    %c0_21 = arith.constant 0 : index
    %c0_22 = arith.constant 0 : index
    %37 = vector.load %arg8[%c0_21, %c0_22] : memref<256x128xbf16, #tpu.memory_space<vmem>>, vector<256x128xbf16>
    %cst_23 = arith.constant dense<0.000000e+00> : vector<8x128xf32>
    %38 = tpu.matmul %24, %37, %cst_23 {dimension_numbers = #tpu.dot_dimension_numbers<[1], [0], [0], [1], [0, 0, 1, 1], [], []>} : vector<8x256xbf16>, vector<256x128xbf16>, vector<8x128xf32> -> vector<8x128xf32>
    %c0_24 = arith.constant 0 : index
    %c0_25 = arith.constant 0 : index
    %39 = vector.load %arg9[%c0_24, %c0_25] : memref<256x128xbf16, #tpu.memory_space<vmem>>, vector<256x128xbf16>
    %cst_26 = arith.constant dense<0.000000e+00> : vector<8x128xf32>
    %40 = tpu.matmul %36, %39, %cst_26 {dimension_numbers = #tpu.dot_dimension_numbers<[1], [0], [0], [1], [0, 0, 1, 1], [], []>} : vector<8x256xbf16>, vector<256x128xbf16>, vector<8x128xf32> -> vector<8x128xf32>
    %41 = arith.addf %38, %40 : vector<8x128xf32>
    %c0_27 = arith.constant 0 : index
    %c0_28 = arith.constant 0 : index
    %42 = vector.load %arg10[%c0_27, %c0_28] : memref<1x128xf32, #tpu.memory_space<vmem>>, vector<1x128xf32>
    %43 = vector.broadcast %42 : vector<1x128xf32> to vector<8x128xf32>
    %44 = arith.addf %41, %43 : vector<8x128xf32>
    %c0_29 = arith.constant 0 : index
    %c0_30 = arith.constant 0 : index
    %45 = vector.load %arg11[%c0_29, %c0_30] : memref<8x128xf32, #tpu.memory_space<vmem>>, vector<8x128xf32>
    tpu.vector_store %arg11[%c0_29, %c0_30], %44 {strides = array<i32>} : memref<8x128xf32, #tpu.memory_space<vmem>>, vector<8x128xf32>,
    return
  }
  func.func @transform_0(%arg0: i32) -> (i32, i32) {
    %c0_i32 = arith.constant 0 : i32
    %c0_i32_0 = arith.constant 0 : i32
    return %arg0, %c0_i32 : i32, i32
  }
  func.func @transform_1(%arg0: i32) -> (i32, i32) {
    %c0_i32 = arith.constant 0 : i32
    %c0_i32_0 = arith.constant 0 : i32
    %c0_i32_1 = arith.constant 0 : i32
    return %c0_i32, %c0_i32_0 : i32, i32
  }
  func.func @transform_2(%arg0: i32) -> (i32, i32) {
    %c0_i32 = arith.constant 0 : i32
    %c0_i32_0 = arith.constant 0 : i32
    %c0_i32_1 = arith.constant 0 : i32
    return %c0_i32, %c0_i32_0 : i32, i32
  }
  func.func @transform_3(%arg0: i32) -> (i32, i32) {
    %c0_i32 = arith.constant 0 : i32
    %c0_i32_0 = arith.constant 0 : i32
    %c0_i32_1 = arith.constant 0 : i32
    return %c0_i32, %c0_i32_0 : i32, i32
  }
  func.func @transform_4(%arg0: i32) -> (i32, i32) {
    %c0_i32 = arith.constant 0 : i32
    %c0_i32_0 = arith.constant 0 : i32
    %c0_i32_1 = arith.constant 0 : i32
    return %c0_i32, %c0_i32_0 : i32, i32
  }
  func.func @transform_5(%arg0: i32) -> (i32, i32) {
    %c0_i32 = arith.constant 0 : i32
    %c0_i32_0 = arith.constant 0 : i32
    %c0_i32_1 = arith.constant 0 : i32
    return %c0_i32, %c0_i32_0 : i32, i32
  }
  func.func @transform_6(%arg0: i32) -> (i32, i32) {
    %c0_i32 = arith.constant 0 : i32
    %c0_i32_0 = arith.constant 0 : i32
    %c0_i32_1 = arith.constant 0 : i32
    return %c0_i32, %c0_i32_0 : i32, i32
  }
  func.func @transform_7(%arg0: i32) -> (i32, i32) {
    %c0_i32 = arith.constant 0 : i32
    %c0_i32_0 = arith.constant 0 : i32
    %c0_i32_1 = arith.constant 0 : i32
    return %c0_i32, %c0_i32_0 : i32, i32
  }
  func.func @transform_8(%arg0: i32) -> (i32, i32) {
    %c0_i32 = arith.constant 0 : i32
    %c0_i32_0 = arith.constant 0 : i32
    %c0_i32_1 = arith.constant 0 : i32
    return %c0_i32, %c0_i32_0 : i32, i32
  }
  func.func @transform_9(%arg0: i32) -> (i32, i32) {
    %c0_i32 = arith.constant 0 : i32
    %c0_i32_0 = arith.constant 0 : i32
    %c0_i32_1 = arith.constant 0 : i32
    return %c0_i32, %c0_i32_0 : i32, i32
  }
  func.func @transform_10(%arg0: i32) -> (i32, i32) {
    %c0_i32 = arith.constant 0 : i32
    %c0_i32_0 = arith.constant 0 : i32
    return %arg0, %c0_i32 : i32, i32
  }
}

</mosaic_0001>

<bundles_post_ra>
// kernel: _pallas_forward.1
= control target key start
LH: loop header
LB: loop body
LE: loop exit
PB: predicated region body
PF: predicated region fallthrough
CT: control target
= control target key end

     0   :  { %15 = vsyncpa [#allocation3], 0  ;;  %s2592_s0 = inlined_call_operand.hbm [shape: f32[8,32], index: 0, kind: input, shape index: {}]   ;;  %s2593_s1 = inlined_call_operand.hbm [shape: bf16[32,1024], index: 1, kind: input, shape index: {}]   ;;  %s2594_s2 = inlined_call_operand.hbm [shape: f32[1,1024], index: 2, kind: input, shape index: {}]   ;;  %s2595_s3 = inlined_call_operand.hbm [shape: bf16[512,256], index: 3, kind: input, shape index: {}]   ;;  %s2596_s4 = inlined_call_operand.vmem [shape: f32[1,256], index: 4, kind: input, shape index: {}]   ;;  %s2597_s5 = inlined_call_operand.hbm [shape: bf16[512,256], index: 5, kind: input, shape index: {}]   ;;  %s2598_s6 = inlined_call_operand.vmem [shape: f32[1,256], index: 6, kind: input, shape index: {}]   ;;  %s2599_s7 = inlined_call_operand.hbm [shape: bf16[256,128], index: 7, kind: input, shape index: {}]   ;;  %s2600_s8 = inlined_call_operand.hbm [shape: bf16[256,128], index: 8, kind: input, shape index: {}]   ;;  %s2601_s9 = inlined_call_operand.vmem [shape: f32[1,128], index: 9, kind: input, shape index: {}]   ;;  %s2602_s10 = inlined_call_operand.hbm [shape: f32[8,128], index: 10, kind: output, shape index: {}]  }
   0x1   :  { %16 = vsyncpa [#allocation6], 0 }
   0x2   :  { %17 = vsyncpa [#allocation9], 0 }
   0x3   :  { %18 = vsyncpa [#allocation12], 0 }
   0x4   :  { %19 = vsyncpa [#allocation4], 0  ;;  %s2437_s13 = smov [#allocation5]  }
   0x5   :  { %s35_s14 = sshll.u32 %s2437_s13, 4  ;;  %s36_s14 = int_to_ptr.vmem [resolvable:$true] %s35_s14 }
   0x6   :  { %s2275_s15 = scalar_lea.vmem %s36_s14, 2048  ;;  %p2280_p1 = scmp.lt.s32.totalorder %s36_s14, %s36_s14 }
   0x7   :  { %p2276_p0 = scmp.ne.s32.totalorder %s36_s14, %s2275_s15  ;;  %p2281_p2 = scmp.lt.s32.totalorder %s2275_s15, %s2275_s15 }
   0x9   :  { %p2282_p3 = por %p2281_p2, %p2280_p1 }
   0xb   :  { %p2283_p4 = pnand %p2282_p3, %p2276_p0 }
   0xd   :  { %2286 = shalt.err (!%p2283_p4)
}
   0xe   :  { %s2438_s16 = smov 512   ;;  %s2439_s17 = smov 32  }
   0xf   :  { %41 = dma.hbm_to_vmem [thread:$0]  %s2593_s1, 2048, %s36_s14, [#allocation6], %s2438_s16, %s2438_s16, %s2439_s17  }
  0x10   :  { %s2440_s20 = smov [#allocation8]  }
  0x11   :  { %s57_s21 = sshll.u32 %s2440_s20, 4  ;;  %s58_s21 = int_to_ptr.vmem [resolvable:$true] %s57_s21 }
  0x12   :  { %s2295_s22 = scalar_lea.vmem %s58_s21, 8192  ;;  %p2300_p6 = scmp.lt.s32.totalorder %s58_s21, %s58_s21 }
  0x13   :  { %p2296_p5 = scmp.ne.s32.totalorder %s58_s21, %s2295_s22  ;;  %p2301_p7 = scmp.lt.s32.totalorder %s2295_s22, %s2295_s22 }
  0x15   :  { %p2302_p8 = por %p2301_p7, %p2300_p6 }
  0x17   :  { %p2303_p9 = pnand %p2302_p8, %p2296_p5 }
  0x19   :  { %2306 = shalt.err (!%p2303_p9)
}
  0x1a   :  { %s2441_s23 = smov 128   ;;  %s2442_s24 = smov 8  }
  0x1b   :  { %63 = dma.hbm_to_vmem [thread:$0]  %s2595_s3, 8192, %s58_s21, [#allocation9], %s2441_s23, %s2441_s23, %s2442_s24  }
  0x1c   :  { %s2443_s1 = smov [#allocation11]  }
  0x1d   :  { %s85_s27 = sshll.u32 %s2443_s1, 4  ;;  %s86_s27 = int_to_ptr.vmem [resolvable:$true] %s85_s27 }
  0x1e   :  { %s2315_s28 = scalar_lea.vmem %s86_s27, 2048  ;;  %p2320_p11 = scmp.lt.s32.totalorder %s86_s27, %s86_s27 }
  0x1f   :  { %p2316_p10 = scmp.ne.s32.totalorder %s86_s27, %s2315_s28  ;;  %p2321_p12 = scmp.lt.s32.totalorder %s2315_s28, %s2315_s28 }
  0x21   :  { %p2322_p13 = por %p2321_p12, %p2320_p11 }
  0x23   :  { %p2323_p0 = pnand %p2322_p13, %p2316_p10 }
  0x25   :  { %2326 = shalt.err (!%p2323_p0)
}
  0x26   :  { %s2444_s29 = smov 64   ;;  %s2445_s30 = smov 4  }
  0x27   :  { %91 = dma.hbm_to_vmem [thread:$0]  %s2599_s7, 2048, %s86_s27, [#allocation12], %s2444_s29, %s2444_s29, %s2445_s30  }
  0x28   :  { %s2446_s3 = smov [#allocation2]   ;;  %s2447_s14 = smov [#allocation7]  }
  0x29   :  { %s26_s13 = sshll.u32 %s2446_s3, 4  ;;  %s48_s15 = sshll.u32 %s2447_s14, 4  ;;  %s27_s13 = int_to_ptr.vmem [resolvable:$true] %s26_s13  ;;  %s49_s15 = int_to_ptr.vmem [resolvable:$true] %s48_s15 }
  0x2a   :  { %s2335_s16 = scalar_lea.vmem %s27_s13, 128  ;;  %p2340_p2 = scmp.lt.s32.totalorder %s27_s13, %s27_s13 }
  0x2b   :  { %p2336_p1 = scmp.ne.s32.totalorder %s27_s13, %s2335_s16  ;;  %p2341_p3 = scmp.lt.s32.totalorder %s2335_s16, %s2335_s16 }
  0x2d   :  { %p2342_p4 = por %p2341_p3, %p2340_p2 }
  0x2f   :  { %p2343_p5 = pnand %p2342_p4, %p2336_p1 }
  0x31   :  { %2346 = shalt.err (!%p2343_p5)
}
  0x32   :  { %29 = dma.hbm_to_vmem [thread:$0]  %s2592_s0, 128, %s27_s13, [#allocation3]  }
  0x33   :  { %s2355_s19 = scalar_lea.vmem %s49_s15, 128  ;;  %p2360_p7 = scmp.lt.s32.totalorder %s49_s15, %s49_s15 }
  0x34   :  { %p2356_p6 = scmp.ne.s32.totalorder %s49_s15, %s2355_s19  ;;  %p2361_p8 = scmp.lt.s32.totalorder %s2355_s19, %s2355_s19 }
  0x36   :  { %p2362_p9 = por %p2361_p8, %p2360_p7 }
  0x38   :  { %p2363_p10 = pnand %p2362_p9, %p2356_p6 }
  0x3a   :  { %2366 = shalt.err (!%p2363_p10)
}
  0x3b   :  { %51 = dma.hbm_to_vmem [thread:$0]  %s2594_s2, 128, %s49_s15, [#allocation6]  }
  0x3c   :  { %s2448_s21 = smov [#allocation10]   ;;  %s2449_s25 = smov [#allocation13]  }
  0x3d   :  { %s71_s22 = sshll.u32 %s2448_s21, 4  ;;  %s97_s26 = sshll.u32 %s2449_s25, 4  ;;  %s72_s22 = int_to_ptr.vmem [resolvable:$true] %s71_s22  ;;  %s98_s26 = int_to_ptr.vmem [resolvable:$true] %s97_s26 }
  0x3e   :  { %s2375_s1 = scalar_lea.vmem %s72_s22, 8192  ;;  %p2380_p12 = scmp.lt.s32.totalorder %s72_s22, %s72_s22 }
  0x3f   :  { %p2376_p11 = scmp.ne.s32.totalorder %s72_s22, %s2375_s1  ;;  %p2381_p13 = scmp.lt.s32.totalorder %s2375_s1, %s2375_s1 }
  0x41   :  { %p2382_p0 = por %p2381_p13, %p2380_p12 }
  0x43   :  { %p2383_p1 = pnand %p2382_p0, %p2376_p11 }
  0x45   :  { %2386 = shalt.err (!%p2383_p1)
}
  0x46   :  { %77 = dma.hbm_to_vmem [thread:$0]  %s2597_s5, 8192, %s72_s22, [#allocation9], %s2441_s23, %s2441_s23, %s2442_s24  }
  0x47   :  { %s2395_s2 = scalar_lea.vmem %s98_s26, 2048  ;;  %p2400_p3 = scmp.lt.s32.totalorder %s98_s26, %s98_s26 }
  0x48   :  { %p2396_p2 = scmp.ne.s32.totalorder %s98_s26, %s2395_s2  ;;  %p2401_p4 = scmp.lt.s32.totalorder %s2395_s2, %s2395_s2 }
  0x4a   :  { %p2402_p5 = por %p2401_p4, %p2400_p3 }
  0x4c   :  { %p2403_p6 = pnand %p2402_p5, %p2396_p2 }
  0x4e   :  { %2406 = shalt.err (!%p2403_p6)
}
  0x4f   :  { %103 = dma.hbm_to_vmem [thread:$0]  %s2600_s8, 2048, %s98_s26, [#allocation12], %s2444_s29, %s2444_s29, %s2445_s30  }
  0x50   :  { %2427 = dma.done.wait [#allocation3], 128  }
  0x51   :  { %2428 = vsyncadd [#allocation3], 4294967168 }
  0x52   :  { %2429 = dma.done.wait [#allocation6], 2176  }
  0x53   :  { %2430 = vsyncadd [#allocation6], 4294965120 }
  0x54   :  { %2431 = dma.done.wait [#allocation9], 16384  }
  0x55   :  { %2432 = vsyncadd [#allocation9], 4294950912 }
  0x56   :  { %2433 = dma.done.wait [#allocation12], 4096  }
  0x57   :  { %2434 = vsyncadd [#allocation12], 4294963200  ;;  %v2450_v0 = vmov 0   ;;  %v138_v1 = vld [vmem:[#allocation5 + $0x40] sm:$0xff]  ;;  %v139_v3 = vld [vmem:[#allocation5 + $0x48] sm:$0xff]  ;;  %vm268_vm0 = vcmask 261120  }
  0x58   :  { %304 = vmatprep.mubr.bf16.mxu0 %v2450_v0  ;;  %345 = vmatprep.mubr.bf16.mxu1 %v2450_v0  ;;  %v142_v2 = vld [vmem:[#allocation5 + $0x60] sm:$0xff]  ;;  %v143_v5 = vld [vmem:[#allocation5 + $0x68] sm:$0xff]  ;;  %v140_v15 = vld [vmem:[#allocation5 + $0x50] sm:$0xff]  ;;  %s2451_s29 = smov [#allocation14]  }
  0x59   :  { %v1812_v4 = vcombine.high %v138_v1, %v142_v2  ;;  %v1811_v6 = vcombine.low %v138_v1, %v142_v2  ;;  %v130_v7 = vld [vmem:[#allocation5] sm:$0xff]  ;;  %v1814_v9 = vcombine.high %v139_v3, %v143_v5  ;;  %v1813_v10 = vcombine.low %v139_v3, %v143_v5  ;;  %v131_v12 = vld [vmem:[#allocation5 + $0x8] sm:$0xff]  ;;  %v144_v16 = vld [vmem:[#allocation5 + $0x70] sm:$0xff]  ;;  %s1791_s30 = sshll.u32 %s2451_s29, 4  ;;  %s1792_s30 = int_to_ptr.vmem [resolvable:$true] %s1791_s30 }
  0x5a   :  { %v134_v8 = vld [vmem:[#allocation5 + $0x20] sm:$0xff]  ;;  %v135_v13 = vld [vmem:[#allocation5 + $0x28] sm:$0xff]  ;;  %v141_v17 = vld [vmem:[#allocation5 + $0x58] sm:$0xff]  ;;  %v1816_v22 = vcombine.high %v140_v15, %v144_v16  ;;  %v1815_v29 = vcombine.low %v140_v15, %v144_v16  ;;  %s2407_s12 = scalar_lea.vmem %s1792_s30, 128  ;;  %p2412_p8 = scmp.lt.s32.totalorder %s1792_s30, %s1792_s30 }
  0x5b   :  { %v1804_v11 = vcombine.high %v130_v7, %v134_v8  ;;  %284 = vmatprep.subr.bf16.mxu0 %v1812_v4  ;;  %v1806_v14 = vcombine.high %v131_v12, %v135_v13  ;;  %325 = vmatprep.subr.bf16.mxu1 %v1814_v9  ;;  %v1803_v18 = vcombine.low %v130_v7, %v134_v8  ;;  %v128_v19 = vld [vmem:[#allocation2] sm:$0xff]  ;;  %v132_v23 = vld [vmem:[#allocation5 + $0x10] sm:$0xff]  ;;  %p2408_p7 = scmp.ne.s32.totalorder %s1792_s30, %s2407_s12  ;;  %p2413_p9 = scmp.lt.s32.totalorder %s2407_s12, %s2407_s12 }
  0x5c   :  { %285 = vmatpush1.bf16.msra.mxu0 %v1811_v6  ;;  %v145_v20 = vld [vmem:[#allocation5 + $0x78] sm:$0xff]  ;;  %326 = vmatpush1.bf16.msra.mxu1 %v1813_v10  ;;  %v1805_v21 = vcombine.low %v131_v12, %v135_v13  ;;  %v136_v25 = vld [vmem:[#allocation5 + $0x30] sm:$0xff]  ;;  %v129_v27 = vpack.c.bf16 %v128_v19, %v128_v19 }
  0x5d   :  { %286 = vmatprep.subr.bf16.mxu0 %v1804_v11  ;;  %327 = vmatprep.subr.bf16.mxu1 %v1806_v14  ;;  %v1818_v24 = vcombine.high %v141_v17, %v145_v20  ;;  %v133_v26 = vld [vmem:[#allocation5 + $0x18] sm:$0xff]  ;;  %v1817_v30 = vcombine.low %v141_v17, %v145_v20  ;;  %v1808_v31 = vcombine.high %v132_v23, %v136_v25  ;;  %v2051_v39 = vld [vmem:[#allocation8 + $0x64] ss:$8 sps:$4 sm:$0xff]   ;;  %v2049_v41 = vld [vmem:[#allocation8 + $0x60] ss:$8 sps:$4 sm:$0xff]   ;;  %p2414_p10 = por %p2413_p9, %p2412_p8 }
  0x5e   :  { %v137_v28 = vld [vmem:[#allocation5 + $0x38] sm:$0xff]  ;;  %v1807_v33 = vcombine.low %v132_v23, %v136_v25  ;;  %v2054_v40 = vld [vmem:[#allocation8 + $0x164] ss:$8 sps:$4 sm:$0xff]   ;;  %v2052_v42 = vld [vmem:[#allocation8 + $0x160] ss:$8 sps:$4 sm:$0xff]  }
  0x5f   :  { %v1810_v32 = vcombine.high %v133_v26, %v137_v28  ;;  %v1809_v34 = vcombine.low %v133_v26, %v137_v28  ;;  %v2045_v35 = vld [vmem:[#allocation8 + $0x74] ss:$8 sps:$4 sm:$0xff]   ;;  %v2043_v37 = vld [vmem:[#allocation8 + $0x70] ss:$8 sps:$4 sm:$0xff]   ;;  %v2063_v47 = vld [vmem:[#allocation8 + $0x44] ss:$8 sps:$4 sm:$0xff]   ;;  %p2415_p11 = pnand %p2414_p10, %p2408_p7 }
  0x60   :  { %287 = vmatpush1.bf16.msra.mxu0 %v1803_v18  ;;  %328 = vmatpush1.bf16.msra.mxu1 %v1805_v21  ;;  %v2048_v36 = vld [vmem:[#allocation8 + $0x174] ss:$8 sps:$4 sm:$0xff]   ;;  %v2046_v38 = vld [vmem:[#allocation8 + $0x170] ss:$8 sps:$4 sm:$0xff]   ;;  %v2066_v48 = vld [vmem:[#allocation8 + $0x144] ss:$8 sps:$4 sm:$0xff]  }
  0x61   :  { %366 = vmatprep.subr.bf16.mxu0 %v1816_v22  ;;  %407 = vmatprep.subr.bf16.mxu1 %v1818_v24  ;;  %v2057_v43 = vld [vmem:[#allocation8 + $0x54] ss:$8 sps:$4 sm:$0xff]   ;;  %v2055_v45 = vld [vmem:[#allocation8 + $0x50] ss:$8 sps:$4 sm:$0xff]   ;;  %v2061_v49 = vld [vmem:[#allocation8 + $0x40] ss:$8 sps:$4 sm:$0xff]  }
  0x62   :  { %v2060_v44 = vld [vmem:[#allocation8 + $0x154] ss:$8 sps:$4 sm:$0xff]   ;;  %v2058_v46 = vld [vmem:[#allocation8 + $0x150] ss:$8 sps:$4 sm:$0xff]   ;;  %v2064_v50 = vld [vmem:[#allocation8 + $0x140] ss:$8 sps:$4 sm:$0xff]  }
  0x63   :  { %1819 = vmatmul.mubr.msk.bf16.vlgmr.msra.gmra.mxu0 %vm268_vm0, %v129_v27  ;;  %1820 = vmatmul.mubr.msk.bf16.vlgmr.msra.gmra.mxu1 %vm268_vm0, %v129_v27  ;;  %v2069_v51 = vld [vmem:[#allocation8 + $0x34] ss:$8 sps:$4 sm:$0xff]   ;;  %v2067_v53 = vld [vmem:[#allocation8 + $0x30] ss:$8 sps:$4 sm:$0xff]   ;;  %v2075_v55 = vld [vmem:[#allocation8 + $0x24] ss:$8 sps:$4 sm:$0xff]  }
  0x64   :  { %367 = vmatpush1.bf16.msra.mxu0 %v1815_v29  ;;  %408 = vmatpush1.bf16.msra.mxu1 %v1817_v30  ;;  %v2072_v52 = vld [vmem:[#allocation8 + $0x134] ss:$8 sps:$4 sm:$0xff]   ;;  %v2070_v54 = vld [vmem:[#allocation8 + $0x130] ss:$8 sps:$4 sm:$0xff]   ;;  %v2078_v56 = vld [vmem:[#allocation8 + $0x124] ss:$8 sps:$4 sm:$0xff]  }
  0x65   :  { %368 = vmatprep.subr.bf16.mxu0 %v1808_v31  ;;  %409 = vmatprep.subr.bf16.mxu1 %v1810_v32  ;;  %v2073_v57 = vld [vmem:[#allocation8 + $0x20] ss:$8 sps:$4 sm:$0xff]   ;;  %v2081_v59 = vld [vmem:[#allocation8 + $0x14] ss:$8 sps:$4 sm:$0xff]   ;;  %v2079_v61 = vld [vmem:[#allocation8 + $0x10] ss:$8 sps:$4 sm:$0xff]  }
  0x66   :  { %386 = vmatprep.mubr.bf16.mxu0 %v2450_v0  ;;  %427 = vmatprep.mubr.bf16.mxu1 %v2450_v0  ;;  %v2076_v58 = vld [vmem:[#allocation8 + $0x120] ss:$8 sps:$4 sm:$0xff]   ;;  %v2084_v60 = vld [vmem:[#allocation8 + $0x114] ss:$8 sps:$4 sm:$0xff]   ;;  %v2082_v62 = vld [vmem:[#allocation8 + $0x110] ss:$8 sps:$4 sm:$0xff]  }
  0x67   :  { %v2087_v63 = vld [vmem:[#allocation8 + $0x4] ss:$8 sps:$4 sm:$0xff]   ;;  %v2085_v0 = vld [vmem:[#allocation8] ss:$8 sps:$4 sm:$0xff]   ;;  %v2093_v3 = vld [vmem:[#allocation8 + $0xf4] ss:$8 sps:$4 sm:$0xff]  }
  0x68   :  { %369 = vmatpush1.bf16.msra.mxu0 %v1807_v33  ;;  %410 = vmatpush1.bf16.msra.mxu1 %v1809_v34  ;;  %v2090_v1 = vld [vmem:[#allocation8 + $0x104] ss:$8 sps:$4 sm:$0xff]   ;;  %v2088_v2 = vld [vmem:[#allocation8 + $0x100] ss:$8 sps:$4 sm:$0xff]   ;;  %v2096_v4 = vld [vmem:[#allocation8 + $0x1f4] ss:$8 sps:$4 sm:$0xff]  }
  0x69   :  { %864 = vmatprep.subr.bf16.mxu0 %v2045_v35  ;;  %905 = vmatprep.subr.bf16.mxu1 %v2048_v36  ;;  %v2091_v5 = vld [vmem:[#allocation8 + $0xf0] ss:$8 sps:$4 sm:$0xff]   ;;  %v2099_v7 = vld [vmem:[#allocation8 + $0xe4] ss:$8 sps:$4 sm:$0xff]   ;;  %v2097_v9 = vld [vmem:[#allocation8 + $0xe0] ss:$8 sps:$4 sm:$0xff]  }
  0x6a   :  { %v2094_v6 = vld [vmem:[#allocation8 + $0x1f0] ss:$8 sps:$4 sm:$0xff]   ;;  %v2102_v8 = vld [vmem:[#allocation8 + $0x1e4] ss:$8 sps:$4 sm:$0xff]   ;;  %v2100_v10 = vld [vmem:[#allocation8 + $0x1e0] ss:$8 sps:$4 sm:$0xff]  }
  0x6b   :  { %1821 = vmatmul.mubr.msk.bf16.vlgmr.msra.gmra.mxu0 %vm268_vm0, %v129_v27  ;;  %1822 = vmatmul.mubr.msk.bf16.vlgmr.msra.gmra.mxu1 %vm268_vm0, %v129_v27  ;;  %v2105_v11 = vld [vmem:[#allocation8 + $0xd4] ss:$8 sps:$4 sm:$0xff]   ;;  %v2103_v13 = vld [vmem:[#allocation8 + $0xd0] ss:$8 sps:$4 sm:$0xff]   ;;  %v2111_v15 = vld [vmem:[#allocation8 + $0xc4] ss:$8 sps:$4 sm:$0xff]  }
  0x6c   :  { %865 = vmatpush1.bf16.msra.mxu0 %v2043_v37  ;;  %906 = vmatpush1.bf16.msra.mxu1 %v2046_v38  ;;  %v2108_v12 = vld [vmem:[#allocation8 + $0x1d4] ss:$8 sps:$4 sm:$0xff]   ;;  %v2106_v14 = vld [vmem:[#allocation8 + $0x1d0] ss:$8 sps:$4 sm:$0xff]   ;;  %v2114_v16 = vld [vmem:[#allocation8 + $0x1c4] ss:$8 sps:$4 sm:$0xff]   ;;  %v148_v37 = vlaneseq }
  0x6d   :  { %866 = vmatprep.subr.bf16.mxu0 %v2051_v39  ;;  %907 = vmatprep.subr.bf16.mxu1 %v2054_v40  ;;  %v2109_v17 = vld [vmem:[#allocation8 + $0xc0] ss:$8 sps:$4 sm:$0xff]   ;;  %v2117_v19 = vld [vmem:[#allocation8 + $0xb4] ss:$8 sps:$4 sm:$0xff]   ;;  %v2115_v21 = vld [vmem:[#allocation8 + $0xb0] ss:$8 sps:$4 sm:$0xff]  }
  0x6e   :  { %v2112_v18 = vld [vmem:[#allocation8 + $0x1c0] ss:$8 sps:$4 sm:$0xff]   ;;  %v2120_v20 = vld [vmem:[#allocation8 + $0x1b4] ss:$8 sps:$4 sm:$0xff]   ;;  %v2118_v22 = vld [vmem:[#allocation8 + $0x1b0] ss:$8 sps:$4 sm:$0xff]  }
  0x6f   :  { %v2123_v23 = vld [vmem:[#allocation8 + $0xa4] ss:$8 sps:$4 sm:$0xff]   ;;  %v2121_v25 = vld [vmem:[#allocation8 + $0xa0] ss:$8 sps:$4 sm:$0xff]   ;;  %v2129_v27 = vld [vmem:[#allocation8 + $0x94] ss:$8 sps:$4 sm:$0xff]  }
  0x70   :  { %867 = vmatpush1.bf16.msra.mxu0 %v2049_v41  ;;  %908 = vmatpush1.bf16.msra.mxu1 %v2052_v42  ;;  %v2126_v24 = vld [vmem:[#allocation8 + $0x1a4] ss:$8 sps:$4 sm:$0xff]   ;;  %v2124_v26 = vld [vmem:[#allocation8 + $0x1a0] ss:$8 sps:$4 sm:$0xff]   ;;  %v2132_v28 = vld [vmem:[#allocation8 + $0x194] ss:$8 sps:$4 sm:$0xff]  }
  0x71   :  { %868 = vmatprep.subr.bf16.mxu0 %v2057_v43  ;;  %909 = vmatprep.subr.bf16.mxu1 %v2060_v44  ;;  %v2127_v29 = vld [vmem:[#allocation8 + $0x90] ss:$8 sps:$4 sm:$0xff]   ;;  %v2135_v31 = vld [vmem:[#allocation8 + $0x84] ss:$8 sps:$4 sm:$0xff]   ;;  %v2133_v33 = vld [vmem:[#allocation8 + $0x80] ss:$8 sps:$4 sm:$0xff]  }
  0x72   :  { %v2130_v30 = vld [vmem:[#allocation8 + $0x190] ss:$8 sps:$4 sm:$0xff]   ;;  %v2138_v32 = vld [vmem:[#allocation8 + $0x184] ss:$8 sps:$4 sm:$0xff]   ;;  %v2136_v34 = vld [vmem:[#allocation8 + $0x180] ss:$8 sps:$4 sm:$0xff]  }
  0x73   :  { %v2141_v35 = vld [vmem:[#allocation10 + $0x74] ss:$8 sps:$4 sm:$0xff]   ;;  %v2544_v38 = vshrl.u32 %v148_v37, 7  ;;  %v2159_v37 = vld [vmem:[#allocation10 + $0x44] ss:$8 sps:$4 sm:$0xff]  }
  0x74   :  { %869 = vmatpush1.bf16.msra.mxu0 %v2055_v45  ;;  %910 = vmatpush1.bf16.msra.mxu1 %v2058_v46  ;;  %v2144_v36 = vld [vmem:[#allocation10 + $0x174] ss:$8 sps:$4 sm:$0xff]  }
  0x75   :  { %870 = vmatprep.subr.bf16.mxu0 %v2063_v47  ;;  %911 = vmatprep.subr.bf16.mxu1 %v2066_v48  ;;  %v2547_v39 = vsub.s32 0, %v2544_v38  ;;  %v2549_v40 = vld [vmem:[#allocation7] sm:$0xff]  ;;  %v158_v41 = vsub.s32 2, %v2544_v38  ;;  %v2553_v42 = vsub.s32 1, %v2544_v38  ;;  %v162_v43 = vsub.s32 3, %v2544_v38 }
  0x77   :  { %v151_v44 = vrot.slane %v2549_v40, %v2547_v39  ;;  %v159_v45 = vrot.slane %v2549_v40, %v158_v41  ;;  %v155_v46 = vrot.slane %v2549_v40, %v2553_v42  ;;  %v163_v48 = vrot.slane %v2549_v40, %v162_v43  ;;  %v2162_v43 = vld [vmem:[#allocation10 + $0x144] ss:$8 sps:$4 sm:$0xff]  }
  0x78   :  { %871 = vmatpush1.bf16.msra.mxu0 %v2061_v49  ;;  %912 = vmatpush1.bf16.msra.mxu1 %v2064_v50 }
  0x79   :  { %872 = vmatprep.subr.bf16.mxu0 %v2069_v51  ;;  %913 = vmatprep.subr.bf16.mxu1 %v2072_v52 }
  0x7c   :  { %873 = vmatpush1.bf16.msra.mxu0 %v2067_v53  ;;  %914 = vmatpush1.bf16.msra.mxu1 %v2070_v54 }
  0x7d   :  { %874 = vmatprep.subr.bf16.mxu0 %v2075_v55  ;;  %915 = vmatprep.subr.bf16.mxu1 %v2078_v56  ;;  %v170_v56 = vsub.s32 5, %v2544_v38 }
  0x80   :  { %875 = vmatpush1.bf16.msra.mxu0 %v2073_v57  ;;  %916 = vmatpush1.bf16.msra.mxu1 %v2076_v58 }
  0x81   :  { %876 = vmatprep.subr.bf16.mxu0 %v2081_v59  ;;  %917 = vmatprep.subr.bf16.mxu1 %v2084_v60  ;;  %v178_v60 = vsub.s32 7, %v2544_v38 }
  0x84   :  { %877 = vmatpush1.bf16.msra.mxu0 %v2079_v61  ;;  %918 = vmatpush1.bf16.msra.mxu1 %v2082_v62 }
  0x85   :  { %878 = vmatprep.subr.bf16.mxu0 %v2087_v63  ;;  %919 = vmatprep.subr.bf16.mxu1 %v2090_v1 }
  0x88   :  { %879 = vmatpush1.bf16.msra.mxu0 %v2085_v0  ;;  %920 = vmatpush1.bf16.msra.mxu1 %v2088_v2 }
  0x89   :  { %880 = vmatprep.subr.bf16.mxu0 %v2093_v3  ;;  %921 = vmatprep.subr.bf16.mxu1 %v2096_v4 }
  0x8c   :  { %881 = vmatpush2.bf16.msra.mxu0 %v2091_v5  ;;  %922 = vmatpush2.bf16.msra.mxu1 %v2094_v6  ;;  %v171_v5 = vrot.slane %v2549_v40, %v170_v56  ;;  %v2175_v56 = vld [vmem:[#allocation10 + $0x10] ss:$8 sps:$4 sm:$0xff]  }
  0x8d   :  { %882 = vmatprep.subr.bf16.mxu0 %v2099_v7  ;;  %923 = vmatprep.subr.bf16.mxu1 %v2102_v8  ;;  %v2139_v8 = vld [vmem:[#allocation10 + $0x70] ss:$8 sps:$4 sm:$0xff]  }
  0x90   :  { %883 = vmatpush2.bf16.msra.mxu0 %v2097_v9  ;;  %924 = vmatpush2.bf16.msra.mxu1 %v2100_v10  ;;  %v179_v10 = vrot.slane %v2549_v40, %v178_v60  ;;  %v2181_v60 = vld [vmem:[#allocation10] ss:$8 sps:$4 sm:$0xff]  }
  0x91   :  { %884 = vmatprep.subr.bf16.mxu0 %v2105_v11  ;;  %925 = vmatprep.subr.bf16.mxu1 %v2108_v12 }
  0x94   :  { %885 = vmatpush2.bf16.msra.mxu0 %v2103_v13  ;;  %926 = vmatpush2.bf16.msra.mxu1 %v2106_v14  ;;  %v2142_v13 = vld [vmem:[#allocation10 + $0x170] ss:$8 sps:$4 sm:$0xff]   ;;  %v2147_v14 = vld [vmem:[#allocation10 + $0x64] ss:$8 sps:$4 sm:$0xff]  }
  0x95   :  { %886 = vmatprep.subr.bf16.mxu0 %v2111_v15  ;;  %927 = vmatprep.subr.bf16.mxu1 %v2114_v16 }
  0x98   :  { %887 = vmatpush2.bf16.msra.mxu0 %v2109_v17  ;;  %928 = vmatpush2.bf16.msra.mxu1 %v2112_v18  ;;  %v2150_v17 = vld [vmem:[#allocation10 + $0x164] ss:$8 sps:$4 sm:$0xff]  }
  0x99   :  { %888 = vmatprep.subr.bf16.mxu0 %v2117_v19  ;;  %929 = vmatprep.subr.bf16.mxu1 %v2120_v20 }
  0x9c   :  { %889 = vmatpush2.bf16.msra.mxu0 %v2115_v21  ;;  %930 = vmatpush2.bf16.msra.mxu1 %v2118_v22  ;;  %v2145_v21 = vld [vmem:[#allocation10 + $0x60] ss:$8 sps:$4 sm:$0xff]  }
  0x9d   :  { %890 = vmatprep.subr.bf16.mxu0 %v2123_v23  ;;  %931 = vmatprep.subr.bf16.mxu1 %v2126_v24  ;;  %v2148_v22 = vld [vmem:[#allocation10 + $0x160] ss:$8 sps:$4 sm:$0xff]  }
  0xa0   :  { %891 = vmatpush2.bf16.msra.mxu0 %v2121_v25  ;;  %932 = vmatpush2.bf16.msra.mxu1 %v2124_v26  ;;  %v2153_v25 = vld [vmem:[#allocation10 + $0x54] ss:$8 sps:$4 sm:$0xff]  }
  0xa1   :  { %892 = vmatprep.subr.bf16.mxu0 %v2129_v27  ;;  %933 = vmatprep.subr.bf16.mxu1 %v2132_v28  ;;  %v2156_v28 = vld [vmem:[#allocation10 + $0x154] ss:$8 sps:$4 sm:$0xff]  }
  0xa4   :  { %893 = vmatpush2.bf16.msra.mxu0 %v2127_v29  ;;  %934 = vmatpush2.bf16.msra.mxu1 %v2130_v30 }
  0xa5   :  { %894 = vmatprep.subr.bf16.mxu0 %v2135_v31  ;;  %935 = vmatprep.subr.bf16.mxu1 %v2138_v32 }
  0xa8   :  { %895 = vmatpush2.bf16.msra.mxu0 %v2133_v33  ;;  %936 = vmatpush2.bf16.msra.mxu1 %v2136_v34  ;;  %v2151_v33 = vld [vmem:[#allocation10 + $0x50] ss:$8 sps:$4 sm:$0xff]  }
  0xa9   :  { %1350 = vmatprep.subr.bf16.mxu0 %v2141_v35  ;;  %1391 = vmatprep.subr.bf16.mxu1 %v2144_v36  ;;  %v2154_v36 = vld [vmem:[#allocation10 + $0x150] ss:$8 sps:$4 sm:$0xff]  }
 0x123   :  { %v306_v47 = vpop.f32.mrf.mxu0  ;;  %v347_v50 = vpop.f32.mrf.mxu1 }
 0x124   :  { %v307_v49 = vadd.f32 %v306_v47, %v151_v44  ;;  %v348_v51 = vadd.f32 %v347_v50, %v159_v45  ;;  %v2157_v44 = vld [vmem:[#allocation10 + $0x40] ss:$8 sps:$4 sm:$0xff]   ;;  %v2168_v47 = vld [vmem:[#allocation10 + $0x134] ss:$8 sps:$4 sm:$0xff]   ;;  %v2171_v50 = vld [vmem:[#allocation10 + $0x24] ss:$8 sps:$4 sm:$0xff]  }
 0x125   :  { %v308_v52 = vpop.f32.mrf.mxu0  ;;  %v349_v55 = vpop.f32.mrf.mxu1  ;;  %v2160_v45 = vld [vmem:[#allocation10 + $0x140] ss:$8 sps:$4 sm:$0xff]  }
 0x126   :  { %vm436_vm1 = vcmp.gt.f32.partialorder %v307_v49, 0.0  ;;  %v444_v53 = vmul.f32 0.2, %v307_v49  ;;  %v309_v54 = vadd.f32 %v308_v52, %v155_v46  ;;  %vm438_vm2 = vcmp.gt.f32.partialorder %v348_v51, 0.0  ;;  %v2165_v46 = vld [vmem:[#allocation10 + $0x34] ss:$8 sps:$4 sm:$0xff]  }
 0x127   :  { %v446_v57 = vmul.f32 0.2, %v348_v51  ;;  %v350_v58 = vadd.f32 %v349_v55, %v163_v48  ;;  %v310_v59 = vpop.f32.mrf.mxu0  ;;  %v351_v62 = vpop.f32.mrf.mxu1  ;;  %v2163_v48 = vld [vmem:[#allocation10 + $0x30] ss:$8 sps:$4 sm:$0xff]   ;;  %v2169_v52 = vld [vmem:[#allocation10 + $0x20] ss:$8 sps:$4 sm:$0xff]  }
 0x128   :  { %vm437_vm3 = vcmp.gt.f32.partialorder %v309_v54, 0.0  ;;  %v445_v61 = vmul.f32 0.2, %v309_v54  ;;  %v452_v63 = vsel %vm436_vm1, %v307_v49, %v444_v53  ;;  %v2166_v49 = vld [vmem:[#allocation10 + $0x130] ss:$8 sps:$4 sm:$0xff]  }
 0x129   :  { %vm439_vm4 = vcmp.gt.f32.partialorder %v350_v58, 0.0  ;;  %v447_v0 = vmul.f32 0.2, %v350_v58  ;;  %v311_v1 = vpop.f32.mrf.mxu0  ;;  %v454_v2 = vsel %vm438_vm2, %v348_v51, %v446_v57  ;;  %v352_v3 = vpop.f32.mrf.mxu1  ;;  %v460_v11 = vpack.c.bf16 %v452_v63, %v452_v63  ;;  %v2174_v51 = vld [vmem:[#allocation10 + $0x124] ss:$8 sps:$4 sm:$0xff]  }
 0x12a   :  { %v453_v4 = vsel %vm437_vm3, %v309_v54, %v445_v61  ;;  %v462_v16 = vpack.c.bf16 %v454_v2, %v454_v2  ;;  %v2172_v53 = vld [vmem:[#allocation10 + $0x120] ss:$8 sps:$4 sm:$0xff]   ;;  %v2177_v54 = vld [vmem:[#allocation10 + $0x14] ss:$8 sps:$4 sm:$0xff]   ;;  %v2178_v57 = vld [vmem:[#allocation10 + $0x110] ss:$8 sps:$4 sm:$0xff]  }
 0x12b   :  { %v461_v6 = vpack.c.bf16 %v453_v4, %v453_v4  ;;  %v455_v7 = vsel %vm439_vm4, %v350_v58, %v447_v0  ;;  %v2565_v9 = vpop.f32.mrf.mxu0  ;;  %v2568_v15 = vpop.f32.mrf.mxu1  ;;  %v2180_v55 = vld [vmem:[#allocation10 + $0x114] ss:$8 sps:$4 sm:$0xff]   ;;  %v2183_v58 = vld [vmem:[#allocation10 + $0x4] ss:$8 sps:$4 sm:$0xff]   ;;  %v2184_v61 = vld [vmem:[#allocation10 + $0x100] ss:$8 sps:$4 sm:$0xff]  }
 0x12c   :  { %v463_v12 = vpack.c.bf16 %v455_v7, %v455_v7  ;;  %v2186_v59 = vld [vmem:[#allocation10 + $0x104] ss:$8 sps:$4 sm:$0xff]   ;;  %v2189_v62 = vld [vmem:[#allocation10 + $0xf4] ss:$8 sps:$4 sm:$0xff]   ;;  %v2187_v0 = vld [vmem:[#allocation10 + $0xf0] ss:$8 sps:$4 sm:$0xff]  }
 0x12d   :  { %896 = vmatprep.mubr.bf16.mxu0 %v461_v6  ;;  %v390_v18 = vpop.f32.mrf.mxu0  ;;  %v431_v20 = vpop.f32.mrf.mxu1  ;;  %v2192_v63 = vld [vmem:[#allocation10 + $0x1f4] ss:$8 sps:$4 sm:$0xff]   ;;  %v2190_v1 = vld [vmem:[#allocation10 + $0x1f0] ss:$8 sps:$4 sm:$0xff]   ;;  %v2195_v2 = vld [vmem:[#allocation10 + $0xe4] ss:$8 sps:$4 sm:$0xff]  }
 0x12e   :  { %937 = vmatprep.mubr.bf16.mxu1 %v463_v12  ;;  %897 = vmatmul.mubr.bf16.vlgmr.msra.gmra.mxu0 %v460_v11  ;;  %v391_v19 = vadd.f32 %v390_v18, %v171_v5  ;;  %v432_v24 = vadd.f32 %v431_v20, %v179_v10  ;;  %v2198_v3 = vld [vmem:[#allocation10 + $0x1e4] ss:$8 sps:$4 sm:$0xff]   ;;  %v2193_v4 = vld [vmem:[#allocation10 + $0xe0] ss:$8 sps:$4 sm:$0xff]   ;;  %v2201_v6 = vld [vmem:[#allocation10 + $0xd4] ss:$8 sps:$4 sm:$0xff]  }
 0x12f   :  { %938 = vmatmul.mubr.bf16.vlgmr.msra.gmra.mxu1 %v462_v16  ;;  %1351 = vmatpush1.bf16.msra.mxu0 %v2139_v8  ;;  %v392_v23 = vpop.f32.mrf.mxu0  ;;  %v433_v27 = vpop.f32.mrf.mxu1  ;;  %v2196_v5 = vld [vmem:[#allocation10 + $0x1e0] ss:$8 sps:$4 sm:$0xff]   ;;  %v2204_v7 = vld [vmem:[#allocation10 + $0x1d4] ss:$8 sps:$4 sm:$0xff]   ;;  %v2199_v8 = vld [vmem:[#allocation10 + $0xd0] ss:$8 sps:$4 sm:$0xff]  }
 0x130   :  { %1392 = vmatpush1.bf16.msra.mxu1 %v2142_v13  ;;  %1352 = vmatprep.subr.bf16.mxu0 %v2147_v14  ;;  %vm441_vm5 = vcmp.gt.f32.partialorder %v391_v19, 0.0  ;;  %v449_v26 = vmul.f32 0.2, %v391_v19  ;;  %vm443_vm6 = vcmp.gt.f32.partialorder %v432_v24, 0.0  ;;  %v451_v29 = vmul.f32 0.2, %v432_v24 }
 0x131   :  { %1393 = vmatprep.subr.bf16.mxu1 %v2150_v17  ;;  %v393_v30 = vpop.f32.mrf.mxu0  ;;  %v434_v31 = vpop.f32.mrf.mxu1  ;;  %v2202_v10 = vld [vmem:[#allocation10 + $0x1d0] ss:$8 sps:$4 sm:$0xff]   ;;  %v2207_v11 = vld [vmem:[#allocation10 + $0xc4] ss:$8 sps:$4 sm:$0xff]   ;;  %v2205_v13 = vld [vmem:[#allocation10 + $0xc0] ss:$8 sps:$4 sm:$0xff]  }
 0x132   :  { %v457_v32 = vsel %vm441_vm5, %v391_v19, %v449_v26  ;;  %v459_v35 = vsel %vm443_vm6, %v432_v24, %v451_v29  ;;  %v2210_v12 = vld [vmem:[#allocation10 + $0x1c4] ss:$8 sps:$4 sm:$0xff]   ;;  %v2208_v14 = vld [vmem:[#allocation10 + $0x1c0] ss:$8 sps:$4 sm:$0xff]   ;;  %v2213_v16 = vld [vmem:[#allocation10 + $0xb4] ss:$8 sps:$4 sm:$0xff]  }
 0x133   :  { %1353 = vmatpush1.bf16.msra.mxu0 %v2145_v21  ;;  %v465_v34 = vpack.c.bf16 %v457_v32, %v457_v32  ;;  %v467_v41 = vpack.c.bf16 %v459_v35, %v459_v35  ;;  %v166_v17 = vsub.s32 4, %v2544_v38  ;;  %v2216_v18 = vld [vmem:[#allocation10 + $0x1b4] ss:$8 sps:$4 sm:$0xff]   ;;  %v174_v19 = vsub.s32 6, %v2544_v38  ;;  %v2211_v20 = vld [vmem:[#allocation10 + $0xb0] ss:$8 sps:$4 sm:$0xff]  }
 0x134   :  { %1394 = vmatpush1.bf16.msra.mxu1 %v2148_v22  ;;  %1354 = vmatprep.subr.bf16.mxu0 %v2153_v25  ;;  %v2214_v21 = vld [vmem:[#allocation10 + $0x1b0] ss:$8 sps:$4 sm:$0xff]   ;;  %v2219_v22 = vld [vmem:[#allocation10 + $0xa4] ss:$8 sps:$4 sm:$0xff]   ;;  %v2217_v26 = vld [vmem:[#allocation10 + $0xa0] ss:$8 sps:$4 sm:$0xff]  }
 0x135   :  { %1395 = vmatprep.subr.bf16.mxu1 %v2156_v28  ;;  %1382 = vmatprep.mubr.bf16.mxu0 %v465_v34  ;;  %v167_v23 = vrot.slane %v2549_v40, %v166_v17  ;;  %v2222_v24 = vld [vmem:[#allocation10 + $0x1a4] ss:$8 sps:$4 sm:$0xff]   ;;  %v175_v25 = vrot.slane %v2549_v40, %v174_v19  ;;  %v2220_v27 = vld [vmem:[#allocation10 + $0x1a0] ss:$8 sps:$4 sm:$0xff]   ;;  %v2225_v28 = vld [vmem:[#allocation10 + $0x94] ss:$8 sps:$4 sm:$0xff]  }
 0x136   :  { %1423 = vmatprep.mubr.bf16.mxu1 %v467_v41  ;;  %v2228_v29 = vld [vmem:[#allocation10 + $0x194] ss:$8 sps:$4 sm:$0xff]   ;;  %v2223_v31 = vld [vmem:[#allocation10 + $0x90] ss:$8 sps:$4 sm:$0xff]   ;;  %v2234_v40 = vld [vmem:[#allocation10 + $0x184] ss:$8 sps:$4 sm:$0xff]  }
 0x137   :  { %1355 = vmatpush1.bf16.msra.mxu0 %v2151_v33  ;;  %v389_v38 = vadd.f32 %v2565_v9, %v167_v23  ;;  %v430_v30 = vadd.f32 %v2568_v15, %v175_v25  ;;  %v2226_v32 = vld [vmem:[#allocation10 + $0x190] ss:$8 sps:$4 sm:$0xff]   ;;  %v2231_v33 = vld [vmem:[#allocation10 + $0x84] ss:$8 sps:$4 sm:$0xff]   ;;  %v2232_v9 = vld [vmem:[#allocation10 + $0x180] ss:$8 sps:$4 sm:$0xff]  }
 0x138   :  { %1396 = vmatpush1.bf16.msra.mxu1 %v2154_v36  ;;  %1356 = vmatprep.subr.bf16.mxu0 %v2159_v37  ;;  %v2229_v36 = vld [vmem:[#allocation10 + $0x80] ss:$8 sps:$4 sm:$0xff]   ;;  %v2235_v15 = vld [vmem:[#allocation11 + $0x78] sm:$0xff]  }
 0x139   :  { %1397 = vmatprep.subr.bf16.mxu1 %v2162_v43  ;;  %v448_v34 = vmul.f32 0.2, %v389_v38  ;;  %vm440_vm7 = vcmp.gt.f32.partialorder %v389_v38, 0.0  ;;  %v450_v35 = vmul.f32 0.2, %v430_v30  ;;  %vm442_vm8 = vcmp.gt.f32.partialorder %v430_v30, 0.0 }
 0x13b   :  { %1357 = vmatpush1.bf16.msra.mxu0 %v2157_v44  ;;  %v456_v37 = vsel %vm440_vm7, %v389_v38, %v448_v34  ;;  %v458_v41 = vsel %vm442_vm8, %v430_v30, %v450_v35  ;;  %v2236_v44 = vld [vmem:[#allocation11 + $0x38] sm:$0xff]   ;;  %v1018_v34 = vld [vmem:[%s2598_s6] sm:$0x3] }
 0x13c   :  { %1398 = vmatpush1.bf16.msra.mxu1 %v2160_v45  ;;  %1358 = vmatprep.subr.bf16.mxu0 %v2165_v46  ;;  %v464_v43 = vpack.c.bf16 %v456_v37, %v456_v37  ;;  %v466_v45 = vpack.c.bf16 %v458_v41, %v458_v41  ;;  %v2237_v46 = vld [vmem:[#allocation11 + $0x70] sm:$0xff]   ;;  %v1027_v35 = vrot.slane %v1018_v34, %v2553_v42 }
 0x13d   :  { %1399 = vmatprep.subr.bf16.mxu1 %v2168_v47  ;;  %v2238_v47 = vld [vmem:[#allocation11 + $0x30] sm:$0xff]  }
 0x13f   :  { %1359 = vmatpush1.bf16.msra.mxu0 %v2163_v48  ;;  %v2239_v48 = vld [vmem:[#allocation11 + $0x68] sm:$0xff]  }
 0x140   :  { %1400 = vmatpush1.bf16.msra.mxu1 %v2166_v49  ;;  %1360 = vmatprep.subr.bf16.mxu0 %v2171_v50  ;;  %v2240_v49 = vld [vmem:[#allocation11 + $0x28] sm:$0xff]   ;;  %v2241_v50 = vld [vmem:[#allocation11 + $0x60] sm:$0xff]  }
 0x141   :  { %1401 = vmatprep.subr.bf16.mxu1 %v2174_v51  ;;  %v2242_v51 = vld [vmem:[#allocation11 + $0x20] sm:$0xff]  }
 0x143   :  { %1361 = vmatpush1.bf16.msra.mxu0 %v2169_v52  ;;  %v2243_v52 = vld [vmem:[#allocation11 + $0x58] sm:$0xff]  }
 0x144   :  { %1402 = vmatpush1.bf16.msra.mxu1 %v2172_v53  ;;  %1362 = vmatprep.subr.bf16.mxu0 %v2177_v54  ;;  %v2251_v53 = vld [vmem:[#allocation13 + $0x78] sm:$0xff]  }
 0x145   :  { %1403 = vmatprep.subr.bf16.mxu1 %v2180_v55  ;;  %v2252_v54 = vld [vmem:[#allocation13 + $0x38] sm:$0xff]   ;;  %v2253_v55 = vld [vmem:[#allocation13 + $0x70] sm:$0xff]  }
 0x147   :  { %1363 = vmatpush1.bf16.msra.mxu0 %v2175_v56  ;;  %v2244_v56 = vld [vmem:[#allocation11 + $0x18] sm:$0xff]  }
 0x148   :  { %1404 = vmatpush1.bf16.msra.mxu1 %v2178_v57  ;;  %1364 = vmatprep.subr.bf16.mxu0 %v2183_v58  ;;  %v2245_v57 = vld [vmem:[#allocation11 + $0x50] sm:$0xff]  }
 0x149   :  { %1405 = vmatprep.subr.bf16.mxu1 %v2186_v59  ;;  %v2254_v58 = vld [vmem:[#allocation13 + $0x30] sm:$0xff]   ;;  %v2255_v59 = vld [vmem:[#allocation13 + $0x68] sm:$0xff]  }
 0x14b   :  { %1365 = vmatpush1.bf16.msra.mxu0 %v2181_v60  ;;  %v2246_v60 = vld [vmem:[#allocation11 + $0x10] sm:$0xff]  }
 0x14c   :  { %1406 = vmatpush1.bf16.msra.mxu1 %v2184_v61  ;;  %1366 = vmatprep.subr.bf16.mxu0 %v2189_v62  ;;  %v2247_v61 = vld [vmem:[#allocation11 + $0x48] sm:$0xff]  }
 0x14d   :  { %1407 = vmatprep.subr.bf16.mxu1 %v2192_v63  ;;  %v2256_v62 = vld [vmem:[#allocation13 + $0x28] sm:$0xff]   ;;  %v2257_v63 = vld [vmem:[#allocation13 + $0x60] sm:$0xff]  }
 0x14f   :  { %1367 = vmatpush2.bf16.msra.mxu0 %v2187_v0  ;;  %v2248_v0 = vld [vmem:[#allocation11 + $0x8] sm:$0xff]  }
 0x150   :  { %1408 = vmatpush2.bf16.msra.mxu1 %v2190_v1  ;;  %1368 = vmatprep.subr.bf16.mxu0 %v2195_v2  ;;  %v2249_v1 = vld [vmem:[#allocation11 + $0x40] sm:$0xff]  }
 0x151   :  { %1409 = vmatprep.subr.bf16.mxu1 %v2198_v3  ;;  %v2258_v2 = vld [vmem:[#allocation13 + $0x20] sm:$0xff]   ;;  %v2259_v3 = vld [vmem:[#allocation13 + $0x58] sm:$0xff]  }
 0x153   :  { %1369 = vmatpush2.bf16.msra.mxu0 %v2193_v4  ;;  %v2250_v4 = vld [vmem:[#allocation11] sm:$0xff]  }
 0x154   :  { %1410 = vmatpush2.bf16.msra.mxu1 %v2196_v5  ;;  %1370 = vmatprep.subr.bf16.mxu0 %v2201_v6  ;;  %v2260_v5 = vld [vmem:[#allocation13 + $0x18] sm:$0xff]   ;;  %v2261_v6 = vld [vmem:[#allocation13 + $0x50] sm:$0xff]  }
 0x155   :  { %1411 = vmatprep.subr.bf16.mxu1 %v2204_v7  ;;  %v2262_v7 = vld [vmem:[#allocation13 + $0x10] sm:$0xff]  }
 0x157   :  { %1371 = vmatpush2.bf16.msra.mxu0 %v2199_v8  ;;  %v2263_v8 = vld [vmem:[#allocation13 + $0x48] sm:$0xff]  }
 0x158   :  { %1412 = vmatpush2.bf16.msra.mxu1 %v2202_v10  ;;  %1372 = vmatprep.subr.bf16.mxu0 %v2207_v11  ;;  %v2264_v10 = vld [vmem:[#allocation13 + $0x8] sm:$0xff]   ;;  %v2265_v11 = vld [vmem:[#allocation13 + $0x40] sm:$0xff]  }
 0x159   :  { %1413 = vmatprep.subr.bf16.mxu1 %v2210_v12  ;;  %v2266_v12 = vld [vmem:[#allocation13] sm:$0xff]  }
 0x15b   :  { %1373 = vmatpush2.bf16.msra.mxu0 %v2205_v13  ;;  %v532_v13 = vld [vmem:[%s2596_s4] sm:$0x3] }
 0x15c   :  { %1414 = vmatpush2.bf16.msra.mxu1 %v2208_v14  ;;  %1374 = vmatprep.subr.bf16.mxu0 %v2213_v16  ;;  %v537_v14 = vrot.slane %v532_v13, %v2547_v39  ;;  %v541_v16 = vrot.slane %v532_v13, %v2553_v42 }
 0x15d   :  { %1415 = vmatprep.subr.bf16.mxu1 %v2216_v18 }
 0x15f   :  { %1375 = vmatpush2.bf16.msra.mxu0 %v2211_v20 }
 0x160   :  { %1416 = vmatpush2.bf16.msra.mxu1 %v2214_v21  ;;  %1376 = vmatprep.subr.bf16.mxu0 %v2219_v22 }
 0x161   :  { %1417 = vmatprep.subr.bf16.mxu1 %v2222_v24 }
 0x163   :  { %1377 = vmatpush2.bf16.msra.mxu0 %v2217_v26 }
 0x164   :  { %1418 = vmatpush2.bf16.msra.mxu1 %v2220_v27  ;;  %1378 = vmatprep.subr.bf16.mxu0 %v2225_v28 }
 0x165   :  { %1419 = vmatprep.subr.bf16.mxu1 %v2228_v29 }
 0x167   :  { %1379 = vmatpush2.bf16.msra.mxu0 %v2223_v31 }
 0x168   :  { %1420 = vmatpush2.bf16.msra.mxu1 %v2226_v32  ;;  %1380 = vmatprep.subr.bf16.mxu0 %v2231_v33 }
 0x169   :  { %1421 = vmatprep.subr.bf16.mxu1 %v2234_v40  ;;  %v1023_v40 = vrot.slane %v1018_v34, %v2547_v39 }
 0x16b   :  { %1381 = vmatpush2.bf16.msra.mxu0 %v2229_v36 }
 0x16c   :  { %1422 = vmatpush2.bf16.msra.mxu1 %v2232_v9  ;;  %1984 = vmatprep.subr.bf16.mxu0 %v2251_v53 }
 0x16d   :  { %2006 = vmatprep.subr.bf16.mxu1 %v2235_v15 }
 0x16e   :  { %1383 = vmatmul.mubr.bf16.vlgmr.msra.gmra.mxu0 %v464_v43 }
 0x16f   :  { %1424 = vmatmul.mubr.bf16.vlgmr.msra.gmra.mxu1 %v466_v45  ;;  %1985 = vmatpush3.bf16.msra.mxu0 %v2252_v54 }
 0x170   :  { %2007 = vmatpush3.bf16.msra.mxu1 %v2236_v44  ;;  %1986 = vmatprep.subr.bf16.mxu0 %v2253_v55 }
 0x171   :  { %2008 = vmatprep.subr.bf16.mxu1 %v2237_v46 }
 0x173   :  { %1987 = vmatpush3.bf16.msra.mxu0 %v2254_v58 }
 0x174   :  { %2009 = vmatpush3.bf16.msra.mxu1 %v2238_v47  ;;  %1988 = vmatprep.subr.bf16.mxu0 %v2255_v59 }
 0x175   :  { %2010 = vmatprep.subr.bf16.mxu1 %v2239_v48 }
 0x177   :  { %1989 = vmatpush3.bf16.msra.mxu0 %v2256_v62 }
 0x178   :  { %2011 = vmatpush3.bf16.msra.mxu1 %v2240_v49  ;;  %1990 = vmatprep.subr.bf16.mxu0 %v2257_v63  ;;  %v1983_v63 = vld [vmem:[%s2601_s9] ss:$0 sm:$0xff] }
 0x179   :  { %2012 = vmatprep.subr.bf16.mxu1 %v2241_v50 }
 0x17b   :  { %1991 = vmatpush3.bf16.msra.mxu0 %v2258_v2 }
 0x17c   :  { %2013 = vmatpush3.bf16.msra.mxu1 %v2242_v51  ;;  %1992 = vmatprep.subr.bf16.mxu0 %v2259_v3 }
 0x17d   :  { %2014 = vmatprep.subr.bf16.mxu1 %v2243_v52 }
 0x17f   :  { %1993 = vmatpush3.bf16.msra.mxu0 %v2260_v5 }
 0x180   :  { %2015 = vmatpush3.bf16.msra.mxu1 %v2244_v56  ;;  %1994 = vmatprep.subr.bf16.mxu0 %v2261_v6 }
 0x181   :  { %2016 = vmatprep.subr.bf16.mxu1 %v2245_v57 }
 0x183   :  { %1995 = vmatpush3.bf16.msra.mxu0 %v2262_v7 }
 0x184   :  { %2017 = vmatpush3.bf16.msra.mxu1 %v2246_v60  ;;  %1996 = vmatprep.subr.bf16.mxu0 %v2263_v8 }
 0x185   :  { %2018 = vmatprep.subr.bf16.mxu1 %v2247_v61 }
 0x187   :  { %1997 = vmatpush3.bf16.msra.mxu0 %v2264_v10 }
 0x188   :  { %2019 = vmatpush3.bf16.msra.mxu1 %v2248_v0  ;;  %1998 = vmatprep.subr.bf16.mxu0 %v2265_v11 }
 0x189   :  { %2020 = vmatprep.subr.bf16.mxu1 %v2249_v1 }
 0x18b   :  { %1999 = vmatpush3.bf16.msra.mxu0 %v2266_v12 }
 0x18c   :  { %2021 = vmatpush3.bf16.msra.mxu1 %v2250_v4 }
 0x1ee   :  { %v898_v17 = vpop.f32.mrf.mxu0 }
 0x1ef   :  { %v899_v18 = vadd.f32 %v898_v17, %v537_v14  ;;  %v939_v19 = vpop.f32.mrf.mxu1 }
 0x1f0   :  { %v900_v20 = vpop.f32.mrf.mxu0 }
 0x1f1   :  { %v940_v21 = vadd.f32 %v939_v19, %v899_v18  ;;  %v901_v22 = vadd.f32 %v900_v20, %v541_v16  ;;  %v941_v23 = vpop.f32.mrf.mxu1 }
 0x1f2   :  { %v902_v24 = vpop.f32.mrf.mxu0 }
 0x1f3   :  { %vm946_vm9 = vcmp.gt.f32.partialorder %v940_v21, 0.0  ;;  %v948_v25 = vmul.f32 0.2, %v940_v21  ;;  %v942_v26 = vadd.f32 %v941_v23, %v901_v22  ;;  %v943_v27 = vpop.f32.mrf.mxu1 }
 0x1f4   :  { %v903_v28 = vpop.f32.mrf.mxu0 }
 0x1f5   :  { %vm947_vm10 = vcmp.gt.f32.partialorder %v942_v26, 0.0  ;;  %v949_v38 = vmul.f32 0.2, %v942_v26  ;;  %v944_v29 = vpop.f32.mrf.mxu1  ;;  %v950_v30 = vsel %vm946_vm9, %v940_v21, %v948_v25 }
 0x1f6   :  { %v952_v33 = vpack.c.bf16 %v950_v30, %v950_v30 }
 0x1f7   :  { %v951_v31 = vsel %vm947_vm10, %v942_v26, %v949_v38 }
 0x1f8   :  { %v953_v32 = vpack.c.bf16 %v951_v31, %v951_v31 }
 0x1fa   :  { %1768 = vmatprep.mubr.bf16.mxu1 %v953_v32 }
 0x1fb   :  { %1769 = vmatmul.mubr.bf16.vlgmr.msra.gmra.mxu1 %v952_v33 }
 0x22e   :  { %v1384_v36 = vpop.f32.mrf.mxu0 }
 0x22f   :  { %v1385_v9 = vadd.f32 %v1384_v36, %v1023_v40  ;;  %v1425_v37 = vpop.f32.mrf.mxu1 }
 0x230   :  { %v1386_v15 = vpop.f32.mrf.mxu0 }
 0x231   :  { %v1426_v41 = vadd.f32 %v1425_v37, %v1385_v9  ;;  %v1387_v43 = vadd.f32 %v1386_v15, %v1027_v35  ;;  %v1427_v44 = vpop.f32.mrf.mxu1 }
 0x232   :  { %v1388_v45 = vpop.f32.mrf.mxu0 }
 0x233   :  { %vm1432_vm11 = vcmp.gt.f32.partialorder %v1426_v41, 0.0  ;;  %v1434_v46 = vmul.f32 0.2, %v1426_v41  ;;  %v1428_v47 = vadd.f32 %v1427_v44, %v1387_v43  ;;  %v1429_v48 = vpop.f32.mrf.mxu1 }
 0x234   :  { %v1389_v49 = vpop.f32.mrf.mxu0 }
 0x235   :  { %vm1433_vm12 = vcmp.gt.f32.partialorder %v1428_v47, 0.0  ;;  %v1435_v50 = vmul.f32 0.2, %v1428_v47  ;;  %v1430_v51 = vpop.f32.mrf.mxu1  ;;  %v1436_v52 = vsel %vm1432_vm11, %v1426_v41, %v1434_v46 }
 0x236   :  { %v1438_v42 = vpack.c.bf16 %v1436_v52, %v1436_v52 }
 0x237   :  { %v1437_v39 = vsel %vm1433_vm12, %v1428_v47, %v1435_v50 }
 0x238   :  { %v1439_v53 = vpack.c.bf16 %v1437_v39, %v1437_v39 }
 0x23a   :  { %1632 = vmatprep.mubr.bf16.mxu0 %v1439_v53 }
 0x23b   :  { %1633 = vmatmul.mubr.bf16.vlgmr.msra.gmra.mxu0 %v1438_v42 }
 0x2bb   :  { %v2022_v54 = vpop.f32.mrf.mxu1 }
 0x2bd   :  { %v2023_v55 = vpop.f32.mrf.mxu1 }
 0x2be   :  { %v2024_v56 = vadd.f32 %v2023_v55, %v2022_v54 }
 0x2bf   :  { %v2025_v57 = vpop.f32.mrf.mxu1 }
 0x2c1   :  { %v2026_v58 = vpop.f32.mrf.mxu1 }
 0x2fb   :  { %v2000_v59 = vpop.f32.mrf.mxu0 }
 0x2fd   :  { %v2001_v60 = vpop.f32.mrf.mxu0 }
 0x2fe   :  { %v2002_v61 = vadd.f32 %v2001_v60, %v2000_v59 }
 0x2ff   :  { %v2003_v62 = vpop.f32.mrf.mxu0 }
 0x300   :  { %v1771_v0 = vadd.f32 %v2024_v56, %v2002_v61 }
 0x301   :  { %v2004_v1 = vpop.f32.mrf.mxu0 }
 0x302   :  { %v1783_v2 = vadd.f32 %v1983_v63, %v1771_v0 }
 0x304   :  { %1784 = vst [vmem:[#allocation14] sm:$0xff] %v1783_v2 }
 0x305   :  { %2418 = shalt.err (!%p2415_p11)
}
 0x306   :  { %1794 = dma.vmem_to_hbm [thread:$0]  %s1792_s30, 128, %s2602_s10, [#allocation4]  }
 0x307   :  { %2435 = dma.done.wait [#allocation4], 128  }
 0x308   :  { %2436 = vsyncadd [#allocation4], 4294967168 }
 0x309   :  { %1798 = vsyncpa [#allocation3], 1 }
 0x30a   :  { %1799 = vsyncpa [#allocation6], 1 }
 0x30b   :  { %1800 = vsyncpa [#allocation9], 1 }
 0x30c   :  { %1801 = vsyncpa [#allocation12], 1 }
 0x30d   :  { %1802 = vsyncpa [#allocation4], 1 }

// kernel: _pallas_forward.1
= control target key start
LH: loop header
LB: loop body
LE: loop exit
PB: predicated region body
PF: predicated region fallthrough
CT: control target
= control target key end

     0   :  { %15 = vsyncpa [#allocation3], 0  ;;  %s2592_s0 = inlined_call_operand.hbm [shape: f32[8,32], index: 0, kind: input, shape index: {}]   ;;  %s2593_s1 = inlined_call_operand.hbm [shape: bf16[32,1024], index: 1, kind: input, shape index: {}]   ;;  %s2594_s2 = inlined_call_operand.hbm [shape: f32[1,1024], index: 2, kind: input, shape index: {}]   ;;  %s2595_s3 = inlined_call_operand.hbm [shape: bf16[512,256], index: 3, kind: input, shape index: {}]   ;;  %s2596_s4 = inlined_call_operand.vmem [shape: f32[1,256], index: 4, kind: input, shape index: {}]   ;;  %s2597_s5 = inlined_call_operand.hbm [shape: bf16[512,256], index: 5, kind: input, shape index: {}]   ;;  %s2598_s6 = inlined_call_operand.vmem [shape: f32[1,256], index: 6, kind: input, shape index: {}]   ;;  %s2599_s7 = inlined_call_operand.hbm [shape: bf16[256,128], index: 7, kind: input, shape index: {}]   ;;  %s2600_s8 = inlined_call_operand.hbm [shape: bf16[256,128], index: 8, kind: input, shape index: {}]   ;;  %s2601_s9 = inlined_call_operand.vmem [shape: f32[1,128], index: 9, kind: input, shape index: {}]   ;;  %s2602_s10 = inlined_call_operand.hbm [shape: f32[8,128], index: 10, kind: output, shape index: {}]  }
   0x1   :  { %16 = vsyncpa [#allocation6], 0 }
   0x2   :  { %17 = vsyncpa [#allocation9], 0 }
   0x3   :  { %18 = vsyncpa [#allocation12], 0 }
   0x4   :  { %19 = vsyncpa [#allocation4], 0  ;;  %s2437_s13 = smov [#allocation5]  }
   0x5   :  { %s35_s14 = sshll.u32 %s2437_s13, 4  ;;  %s36_s14 = int_to_ptr.vmem [resolvable:$true] %s35_s14 }
   0x6   :  { %s2275_s15 = scalar_lea.vmem %s36_s14, 2048  ;;  %p2280_p1 = scmp.lt.s32.totalorder %s36_s14, %s36_s14 }
   0x7   :  { %p2276_p0 = scmp.ne.s32.totalorder %s36_s14, %s2275_s15  ;;  %p2281_p2 = scmp.lt.s32.totalorder %s2275_s15, %s2275_s15 }
   0x9   :  { %p2282_p3 = por %p2281_p2, %p2280_p1 }
   0xb   :  { %p2283_p4 = pnand %p2282_p3, %p2276_p0 }
   0xd   :  { %2286 = shalt.err (!%p2283_p4)
}
   0xe   :  { %s2438_s16 = smov 512   ;;  %s2439_s17 = smov 32  }
   0xf   :  { %41 = dma.hbm_to_vmem [thread:$0]  %s2593_s1, 2048, %s36_s14, [#allocation6], %s2438_s16, %s2438_s16, %s2439_s17  }
  0x10   :  { %s2440_s20 = smov [#allocation8]  }
  0x11   :  { %s57_s21 = sshll.u32 %s2440_s20, 4  ;;  %s58_s21 = int_to_ptr.vmem [resolvable:$true] %s57_s21 }
  0x12   :  { %s2295_s22 = scalar_lea.vmem %s58_s21, 8192  ;;  %p2300_p6 = scmp.lt.s32.totalorder %s58_s21, %s58_s21 }
  0x13   :  { %p2296_p5 = scmp.ne.s32.totalorder %s58_s21, %s2295_s22  ;;  %p2301_p7 = scmp.lt.s32.totalorder %s2295_s22, %s2295_s22 }
  0x15   :  { %p2302_p8 = por %p2301_p7, %p2300_p6 }
  0x17   :  { %p2303_p9 = pnand %p2302_p8, %p2296_p5 }
  0x19   :  { %2306 = shalt.err (!%p2303_p9)
}
  0x1a   :  { %s2441_s23 = smov 128   ;;  %s2442_s24 = smov 8  }
  0x1b   :  { %63 = dma.hbm_to_vmem [thread:$0]  %s2595_s3, 8192, %s58_s21, [#allocation9], %s2441_s23, %s2441_s23, %s2442_s24  }
  0x1c   :  { %s2443_s1 = smov [#allocation11]  }
  0x1d   :  { %s85_s27 = sshll.u32 %s2443_s1, 4  ;;  %s86_s27 = int_to_ptr.vmem [resolvable:$true] %s85_s27 }
  0x1e   :  { %s2315_s28 = scalar_lea.vmem %s86_s27, 2048  ;;  %p2320_p11 = scmp.lt.s32.totalorder %s86_s27, %s86_s27 }
  0x1f   :  { %p2316_p10 = scmp.ne.s32.totalorder %s86_s27, %s2315_s28  ;;  %p2321_p12 = scmp.lt.s32.totalorder %s2315_s28, %s2315_s28 }
  0x21   :  { %p2322_p13 = por %p2321_p12, %p2320_p11 }
  0x23   :  { %p2323_p0 = pnand %p2322_p13, %p2316_p10 }
  0x25   :  { %2326 = shalt.err (!%p2323_p0)
}
  0x26   :  { %s2444_s29 = smov 64   ;;  %s2445_s30 = smov 4  }
  0x27   :  { %91 = dma.hbm_to_vmem [thread:$0]  %s2599_s7, 2048, %s86_s27, [#allocation12], %s2444_s29, %s2444_s29, %s2445_s30  }
  0x28   :  { %s2446_s3 = smov [#allocation2]   ;;  %s2447_s14 = smov [#allocation7]  }
  0x29   :  { %s26_s13 = sshll.u32 %s2446_s3, 4  ;;  %s48_s15 = sshll.u32 %s2447_s14, 4  ;;  %s27_s13 = int_to_ptr.vmem [resolvable:$true] %s26_s13  ;;  %s49_s15 = int_to_ptr.vmem [resolvable:$true] %s48_s15 }
  0x2a   :  { %s2335_s16 = scalar_lea.vmem %s27_s13, 128  ;;  %p2340_p2 = scmp.lt.s32.totalorder %s27_s13, %s27_s13 }
  0x2b   :  { %p2336_p1 = scmp.ne.s32.totalorder %s27_s13, %s2335_s16  ;;  %p2341_p3 = scmp.lt.s32.totalorder %s2335_s16, %s2335_s16 }
  0x2d   :  { %p2342_p4 = por %p2341_p3, %p2340_p2 }
  0x2f   :  { %p2343_p5 = pnand %p2342_p4, %p2336_p1 }
  0x31   :  { %2346 = shalt.err (!%p2343_p5)
}
  0x32   :  { %29 = dma.hbm_to_vmem [thread:$0]  %s2592_s0, 128, %s27_s13, [#allocation3]  }
  0x33   :  { %s2355_s19 = scalar_lea.vmem %s49_s15, 128  ;;  %p2360_p7 = scmp.lt.s32.totalorder %s49_s15, %s49_s15 }
  0x34   :  { %p2356_p6 = scmp.ne.s32.totalorder %s49_s15, %s2355_s19  ;;  %p2361_p8 = scmp.lt.s32.totalorder %s2355_s19, %s2355_s19 }
  0x36   :  { %p2362_p9 = por %p2361_p8, %p2360_p7 }
  0x38   :  { %p2363_p10 = pnand %p2362_p9, %p2356_p6 }
  0x3a   :  { %2366 = shalt.err (!%p2363_p10)
}
  0x3b   :  { %51 = dma.hbm_to_vmem [thread:$0]  %s2594_s2, 128, %s49_s15, [#allocation6]  }
  0x3c   :  { %s2448_s21 = smov [#allocation10]   ;;  %s2449_s25 = smov [#allocation13]  }
  0x3d   :  { %s71_s22 = sshll.u32 %s2448_s21, 4  ;;  %s97_s26 = sshll.u32 %s2449_s25, 4  ;;  %s72_s22 = int_to_ptr.vmem [resolvable:$true] %s71_s22  ;;  %s98_s26 = int_to_ptr.vmem [resolvable:$true] %s97_s26 }
  0x3e   :  { %s2375_s1 = scalar_lea.vmem %s72_s22, 8192  ;;  %p2380_p12 = scmp.lt.s32.totalorder %s72_s22, %s72_s22 }
  0x3f   :  { %p2376_p11 = scmp.ne.s32.totalorder %s72_s22, %s2375_s1  ;;  %p2381_p13 = scmp.lt.s32.totalorder %s2375_s1, %s2375_s1 }
  0x41   :  { %p2382_p0 = por %p2381_p13, %p2380_p12 }
  0x43   :  { %p2383_p1 = pnand %p2382_p0, %p2376_p11 }
  0x45   :  { %2386 = shalt.err (!%p2383_p1)
}
  0x46   :  { %77 = dma.hbm_to_vmem [thread:$0]  %s2597_s5, 8192, %s72_s22, [#allocation9], %s2441_s23, %s2441_s23, %s2442_s24  }
  0x47   :  { %s2395_s2 = scalar_lea.vmem %s98_s26, 2048  ;;  %p2400_p3 = scmp.lt.s32.totalorder %s98_s26, %s98_s26 }
  0x48   :  { %p2396_p2 = scmp.ne.s32.totalorder %s98_s26, %s2395_s2  ;;  %p2401_p4 = scmp.lt.s32.totalorder %s2395_s2, %s2395_s2 }
  0x4a   :  { %p2402_p5 = por %p2401_p4, %p2400_p3 }
  0x4c   :  { %p2403_p6 = pnand %p2402_p5, %p2396_p2 }
  0x4e   :  { %2406 = shalt.err (!%p2403_p6)
}
  0x4f   :  { %103 = dma.hbm_to_vmem [thread:$0]  %s2600_s8, 2048, %s98_s26, [#allocation12], %s2444_s29, %s2444_s29, %s2445_s30  }
  0x50   :  { %2427 = dma.done.wait [#allocation3], 128  }
  0x51   :  { %2428 = vsyncadd [#allocation3], 4294967168 }
  0x52   :  { %2429 = dma.done.wait [#allocation6], 2176  }
  0x53   :  { %2430 = vsyncadd [#allocation6], 4294965120 }
  0x54   :  { %2431 = dma.done.wait [#allocation9], 16384  }
  0x55   :  { %2432 = vsyncadd [#allocation9], 4294950912 }
  0x56   :  { %2433 = dma.done.wait [#allocation12], 4096  }
  0x57   :  { %2434 = vsyncadd [#allocation12], 4294963200  ;;  %v2450_v0 = vmov 0   ;;  %v138_v1 = vld [vmem:[#allocation5 + $0x40] sm:$0xff]  ;;  %v139_v3 = vld [vmem:[#allocation5 + $0x48] sm:$0xff]  ;;  %vm268_vm0 = vcmask 261120  }
  0x58   :  { %304 = vmatprep.mubr.bf16.mxu0 %v2450_v0  ;;  %345 = vmatprep.mubr.bf16.mxu1 %v2450_v0  ;;  %v142_v2 = vld [vmem:[#allocation5 + $0x60] sm:$0xff]  ;;  %v143_v5 = vld [vmem:[#allocation5 + $0x68] sm:$0xff]  ;;  %v140_v15 = vld [vmem:[#allocation5 + $0x50] sm:$0xff]  ;;  %s2451_s29 = smov [#allocation14]  }
  0x59   :  { %v1812_v4 = vcombine.high %v138_v1, %v142_v2  ;;  %v1811_v6 = vcombine.low %v138_v1, %v142_v2  ;;  %v130_v7 = vld [vmem:[#allocation5] sm:$0xff]  ;;  %v1814_v9 = vcombine.high %v139_v3, %v143_v5  ;;  %v1813_v10 = vcombine.low %v139_v3, %v143_v5  ;;  %v131_v12 = vld [vmem:[#allocation5 + $0x8] sm:$0xff]  ;;  %v144_v16 = vld [vmem:[#allocation5 + $0x70] sm:$0xff]  ;;  %s1791_s30 = sshll.u32 %s2451_s29, 4  ;;  %s1792_s30 = int_to_ptr.vmem [resolvable:$true] %s1791_s30 }
  0x5a   :  { %v134_v8 = vld [vmem:[#allocation5 + $0x20] sm:$0xff]  ;;  %v135_v13 = vld [vmem:[#allocation5 + $0x28] sm:$0xff]  ;;  %v141_v17 = vld [vmem:[#allocation5 + $0x58] sm:$0xff]  ;;  %v1816_v22 = vcombine.high %v140_v15, %v144_v16  ;;  %v1815_v29 = vcombine.low %v140_v15, %v144_v16  ;;  %s2407_s12 = scalar_lea.vmem %s1792_s30, 128  ;;  %p2412_p8 = scmp.lt.s32.totalorder %s1792_s30, %s1792_s30 }
  0x5b   :  { %v1804_v11 = vcombine.high %v130_v7, %v134_v8  ;;  %284 = vmatprep.subr.bf16.mxu0 %v1812_v4  ;;  %v1806_v14 = vcombine.high %v131_v12, %v135_v13  ;;  %325 = vmatprep.subr.bf16.mxu1 %v1814_v9  ;;  %v1803_v18 = vcombine.low %v130_v7, %v134_v8  ;;  %v128_v19 = vld [vmem:[#allocation2] sm:$0xff]  ;;  %v132_v23 = vld [vmem:[#allocation5 + $0x10] sm:$0xff]  ;;  %p2408_p7 = scmp.ne.s32.totalorder %s1792_s30, %s2407_s12  ;;  %p2413_p9 = scmp.lt.s32.totalorder %s2407_s12, %s2407_s12 }
  0x5c   :  { %285 = vmatpush1.bf16.msra.mxu0 %v1811_v6  ;;  %v145_v20 = vld [vmem:[#allocation5 + $0x78] sm:$0xff]  ;;  %326 = vmatpush1.bf16.msra.mxu1 %v1813_v10  ;;  %v1805_v21 = vcombine.low %v131_v12, %v135_v13  ;;  %v136_v25 = vld [vmem:[#allocation5 + $0x30] sm:$0xff]  ;;  %v129_v27 = vpack.c.bf16 %v128_v19, %v128_v19 }
  0x5d   :  { %286 = vmatprep.subr.bf16.mxu0 %v1804_v11  ;;  %327 = vmatprep.subr.bf16.mxu1 %v1806_v14  ;;  %v1818_v24 = vcombine.high %v141_v17, %v145_v20  ;;  %v133_v26 = vld [vmem:[#allocation5 + $0x18] sm:$0xff]  ;;  %v1817_v30 = vcombine.low %v141_v17, %v145_v20  ;;  %v1808_v31 = vcombine.high %v132_v23, %v136_v25  ;;  %v2051_v39 = vld [vmem:[#allocation8 + $0x64] ss:$8 sps:$4 sm:$0xff]   ;;  %v2049_v41 = vld [vmem:[#allocation8 + $0x60] ss:$8 sps:$4 sm:$0xff]   ;;  %p2414_p10 = por %p2413_p9, %p2412_p8 }
  0x5e   :  { %v137_v28 = vld [vmem:[#allocation5 + $0x38] sm:$0xff]  ;;  %v1807_v33 = vcombine.low %v132_v23, %v136_v25  ;;  %v2054_v40 = vld [vmem:[#allocation8 + $0x164] ss:$8 sps:$4 sm:$0xff]   ;;  %v2052_v42 = vld [vmem:[#allocation8 + $0x160] ss:$8 sps:$4 sm:$0xff]  }
  0x5f   :  { %v1810_v32 = vcombine.high %v133_v26, %v137_v28  ;;  %v1809_v34 = vcombine.low %v133_v26, %v137_v28  ;;  %v2045_v35 = vld [vmem:[#allocation8 + $0x74] ss:$8 sps:$4 sm:$0xff]   ;;  %v2043_v37 = vld [vmem:[#allocation8 + $0x70] ss:$8 sps:$4 sm:$0xff]   ;;  %v2063_v47 = vld [vmem:[#allocation8 + $0x44] ss:$8 sps:$4 sm:$0xff]   ;;  %p2415_p11 = pnand %p2414_p10, %p2408_p7 }
  0x60   :  { %287 = vmatpush1.bf16.msra.mxu0 %v1803_v18  ;;  %328 = vmatpush1.bf16.msra.mxu1 %v1805_v21  ;;  %v2048_v36 = vld [vmem:[#allocation8 + $0x174] ss:$8 sps:$4 sm:$0xff]   ;;  %v2046_v38 = vld [vmem:[#allocation8 + $0x170] ss:$8 sps:$4 sm:$0xff]   ;;  %v2066_v48 = vld [vmem:[#allocation8 + $0x144] ss:$8 sps:$4 sm:$0xff]  }
  0x61   :  { %366 = vmatprep.subr.bf16.mxu0 %v1816_v22  ;;  %407 = vmatprep.subr.bf16.mxu1 %v1818_v24  ;;  %v2057_v43 = vld [vmem:[#allocation8 + $0x54] ss:$8 sps:$4 sm:$0xff]   ;;  %v2055_v45 = vld [vmem:[#allocation8 + $0x50] ss:$8 sps:$4 sm:$0xff]   ;;  %v2061_v49 = vld [vmem:[#allocation8 + $0x40] ss:$8 sps:$4 sm:$0xff]  }
  0x62   :  { %v2060_v44 = vld [vmem:[#allocation8 + $0x154] ss:$8 sps:$4 sm:$0xff]   ;;  %v2058_v46 = vld [vmem:[#allocation8 + $0x150] ss:$8 sps:$4 sm:$0xff]   ;;  %v2064_v50 = vld [vmem:[#allocation8 + $0x140] ss:$8 sps:$4 sm:$0xff]  }
  0x63   :  { %1819 = vmatmul.mubr.msk.bf16.vlgmr.msra.gmra.mxu0 %vm268_vm0, %v129_v27  ;;  %1820 = vmatmul.mubr.msk.bf16.vlgmr.msra.gmra.mxu1 %vm268_vm0, %v129_v27  ;;  %v2069_v51 = vld [vmem:[#allocation8 + $0x34] ss:$8 sps:$4 sm:$0xff]   ;;  %v2067_v53 = vld [vmem:[#allocation8 + $0x30] ss:$8 sps:$4 sm:$0xff]   ;;  %v2075_v55 = vld [vmem:[#allocation8 + $0x24] ss:$8 sps:$4 sm:$0xff]  }
  0x64   :  { %367 = vmatpush1.bf16.msra.mxu0 %v1815_v29  ;;  %408 = vmatpush1.bf16.msra.mxu1 %v1817_v30  ;;  %v2072_v52 = vld [vmem:[#allocation8 + $0x134] ss:$8 sps:$4 sm:$0xff]   ;;  %v2070_v54 = vld [vmem:[#allocation8 + $0x130] ss:$8 sps:$4 sm:$0xff]   ;;  %v2078_v56 = vld [vmem:[#allocation8 + $0x124] ss:$8 sps:$4 sm:$0xff]  }
  0x65   :  { %368 = vmatprep.subr.bf16.mxu0 %v1808_v31  ;;  %409 = vmatprep.subr.bf16.mxu1 %v1810_v32  ;;  %v2073_v57 = vld [vmem:[#allocation8 + $0x20] ss:$8 sps:$4 sm:$0xff]   ;;  %v2081_v59 = vld [vmem:[#allocation8 + $0x14] ss:$8 sps:$4 sm:$0xff]   ;;  %v2079_v61 = vld [vmem:[#allocation8 + $0x10] ss:$8 sps:$4 sm:$0xff]  }
  0x66   :  { %386 = vmatprep.mubr.bf16.mxu0 %v2450_v0  ;;  %427 = vmatprep.mubr.bf16.mxu1 %v2450_v0  ;;  %v2076_v58 = vld [vmem:[#allocation8 + $0x120] ss:$8 sps:$4 sm:$0xff]   ;;  %v2084_v60 = vld [vmem:[#allocation8 + $0x114] ss:$8 sps:$4 sm:$0xff]   ;;  %v2082_v62 = vld [vmem:[#allocation8 + $0x110] ss:$8 sps:$4 sm:$0xff]  }
  0x67   :  { %v2087_v63 = vld [vmem:[#allocation8 + $0x4] ss:$8 sps:$4 sm:$0xff]   ;;  %v2085_v0 = vld [vmem:[#allocation8] ss:$8 sps:$4 sm:$0xff]   ;;  %v2093_v3 = vld [vmem:[#allocation8 + $0xf4] ss:$8 sps:$4 sm:$0xff]  }
  0x68   :  { %369 = vmatpush1.bf16.msra.mxu0 %v1807_v33  ;;  %410 = vmatpush1.bf16.msra.mxu1 %v1809_v34  ;;  %v2090_v1 = vld [vmem:[#allocation8 + $0x104] ss:$8 sps:$4 sm:$0xff]   ;;  %v2088_v2 = vld [vmem:[#allocation8 + $0x100] ss:$8 sps:$4 sm:$0xff]   ;;  %v2096_v4 = vld [vmem:[#allocation8 + $0x1f4] ss:$8 sps:$4 sm:$0xff]  }
  0x69   :  { %864 = vmatprep.subr.bf16.mxu0 %v2045_v35  ;;  %905 = vmatprep.subr.bf16.mxu1 %v2048_v36  ;;  %v2091_v5 = vld [vmem:[#allocation8 + $0xf0] ss:$8 sps:$4 sm:$0xff]   ;;  %v2099_v7 = vld [vmem:[#allocation8 + $0xe4] ss:$8 sps:$4 sm:$0xff]   ;;  %v2097_v9 = vld [vmem:[#allocation8 + $0xe0] ss:$8 sps:$4 sm:$0xff]  }
  0x6a   :  { %v2094_v6 = vld [vmem:[#allocation8 + $0x1f0] ss:$8 sps:$4 sm:$0xff]   ;;  %v2102_v8 = vld [vmem:[#allocation8 + $0x1e4] ss:$8 sps:$4 sm:$0xff]   ;;  %v2100_v10 = vld [vmem:[#allocation8 + $0x1e0] ss:$8 sps:$4 sm:$0xff]  }
  0x6b   :  { %1821 = vmatmul.mubr.msk.bf16.vlgmr.msra.gmra.mxu0 %vm268_vm0, %v129_v27  ;;  %1822 = vmatmul.mubr.msk.bf16.vlgmr.msra.gmra.mxu1 %vm268_vm0, %v129_v27  ;;  %v2105_v11 = vld [vmem:[#allocation8 + $0xd4] ss:$8 sps:$4 sm:$0xff]   ;;  %v2103_v13 = vld [vmem:[#allocation8 + $0xd0] ss:$8 sps:$4 sm:$0xff]   ;;  %v2111_v15 = vld [vmem:[#allocation8 + $0xc4] ss:$8 sps:$4 sm:$0xff]  }
  0x6c   :  { %865 = vmatpush1.bf16.msra.mxu0 %v2043_v37  ;;  %906 = vmatpush1.bf16.msra.mxu1 %v2046_v38  ;;  %v2108_v12 = vld [vmem:[#allocation8 + $0x1d4] ss:$8 sps:$4 sm:$0xff]   ;;  %v2106_v14 = vld [vmem:[#allocation8 + $0x1d0] ss:$8 sps:$4 sm:$0xff]   ;;  %v2114_v16 = vld [vmem:[#allocation8 + $0x1c4] ss:$8 sps:$4 sm:$0xff]   ;;  %v148_v37 = vlaneseq }
  0x6d   :  { %866 = vmatprep.subr.bf16.mxu0 %v2051_v39  ;;  %907 = vmatprep.subr.bf16.mxu1 %v2054_v40  ;;  %v2109_v17 = vld [vmem:[#allocation8 + $0xc0] ss:$8 sps:$4 sm:$0xff]   ;;  %v2117_v19 = vld [vmem:[#allocation8 + $0xb4] ss:$8 sps:$4 sm:$0xff]   ;;  %v2115_v21 = vld [vmem:[#allocation8 + $0xb0] ss:$8 sps:$4 sm:$0xff]  }
  0x6e   :  { %v2112_v18 = vld [vmem:[#allocation8 + $0x1c0] ss:$8 sps:$4 sm:$0xff]   ;;  %v2120_v20 = vld [vmem:[#allocation8 + $0x1b4] ss:$8 sps:$4 sm:$0xff]   ;;  %v2118_v22 = vld [vmem:[#allocation8 + $0x1b0] ss:$8 sps:$4 sm:$0xff]  }
  0x6f   :  { %v2123_v23 = vld [vmem:[#allocation8 + $0xa4] ss:$8 sps:$4 sm:$0xff]   ;;  %v2121_v25 = vld [vmem:[#allocation8 + $0xa0] ss:$8 sps:$4 sm:$0xff]   ;;  %v2129_v27 = vld [vmem:[#allocation8 + $0x94] ss:$8 sps:$4 sm:$0xff]  }
  0x70   :  { %867 = vmatpush1.bf16.msra.mxu0 %v2049_v41  ;;  %908 = vmatpush1.bf16.msra.mxu1 %v2052_v42  ;;  %v2126_v24 = vld [vmem:[#allocation8 + $0x1a4] ss:$8 sps:$4 sm:$0xff]   ;;  %v2124_v26 = vld [vmem:[#allocation8 + $0x1a0] ss:$8 sps:$4 sm:$0xff]   ;;  %v2132_v28 = vld [vmem:[#allocation8 + $0x194] ss:$8 sps:$4 sm:$0xff]  }
  0x71   :  { %868 = vmatprep.subr.bf16.mxu0 %v2057_v43  ;;  %909 = vmatprep.subr.bf16.mxu1 %v2060_v44  ;;  %v2127_v29 = vld [vmem:[#allocation8 + $0x90] ss:$8 sps:$4 sm:$0xff]   ;;  %v2135_v31 = vld [vmem:[#allocation8 + $0x84] ss:$8 sps:$4 sm:$0xff]   ;;  %v2133_v33 = vld [vmem:[#allocation8 + $0x80] ss:$8 sps:$4 sm:$0xff]  }
  0x72   :  { %v2130_v30 = vld [vmem:[#allocation8 + $0x190] ss:$8 sps:$4 sm:$0xff]   ;;  %v2138_v32 = vld [vmem:[#allocation8 + $0x184] ss:$8 sps:$4 sm:$0xff]   ;;  %v2136_v34 = vld [vmem:[#allocation8 + $0x180] ss:$8 sps:$4 sm:$0xff]  }
  0x73   :  { %v2141_v35 = vld [vmem:[#allocation10 + $0x74] ss:$8 sps:$4 sm:$0xff]   ;;  %v2544_v38 = vshrl.u32 %v148_v37, 7  ;;  %v2159_v37 = vld [vmem:[#allocation10 + $0x44] ss:$8 sps:$4 sm:$0xff]  }
  0x74   :  { %869 = vmatpush1.bf16.msra.mxu0 %v2055_v45  ;;  %910 = vmatpush1.bf16.msra.mxu1 %v2058_v46  ;;  %v2144_v36 = vld [vmem:[#allocation10 + $0x174] ss:$8 sps:$4 sm:$0xff]  }
  0x75   :  { %870 = vmatprep.subr.bf16.mxu0 %v2063_v47  ;;  %911 = vmatprep.subr.bf16.mxu1 %v2066_v48  ;;  %v2547_v39 = vsub.s32 0, %v2544_v38  ;;  %v2549_v40 = vld [vmem:[#allocation7] sm:$0xff]  ;;  %v158_v41 = vsub.s32 2, %v2544_v38  ;;  %v2553_v42 = vsub.s32 1, %v2544_v38  ;;  %v162_v43 = vsub.s32 3, %v2544_v38 }
  0x77   :  { %v151_v44 = vrot.slane %v2549_v40, %v2547_v39  ;;  %v159_v45 = vrot.slane %v2549_v40, %v158_v41  ;;  %v155_v46 = vrot.slane %v2549_v40, %v2553_v42  ;;  %v163_v48 = vrot.slane %v2549_v40, %v162_v43  ;;  %v2162_v43 = vld [vmem:[#allocation10 + $0x144] ss:$8 sps:$4 sm:$0xff]  }
  0x78   :  { %871 = vmatpush1.bf16.msra.mxu0 %v2061_v49  ;;  %912 = vmatpush1.bf16.msra.mxu1 %v2064_v50 }
  0x79   :  { %872 = vmatprep.subr.bf16.mxu0 %v2069_v51  ;;  %913 = vmatprep.subr.bf16.mxu1 %v2072_v52 }
  0x7c   :  { %873 = vmatpush1.bf16.msra.mxu0 %v2067_v53  ;;  %914 = vmatpush1.bf16.msra.mxu1 %v2070_v54 }
  0x7d   :  { %874 = vmatprep.subr.bf16.mxu0 %v2075_v55  ;;  %915 = vmatprep.subr.bf16.mxu1 %v2078_v56  ;;  %v170_v56 = vsub.s32 5, %v2544_v38 }
  0x80   :  { %875 = vmatpush1.bf16.msra.mxu0 %v2073_v57  ;;  %916 = vmatpush1.bf16.msra.mxu1 %v2076_v58 }
  0x81   :  { %876 = vmatprep.subr.bf16.mxu0 %v2081_v59  ;;  %917 = vmatprep.subr.bf16.mxu1 %v2084_v60  ;;  %v178_v60 = vsub.s32 7, %v2544_v38 }
  0x84   :  { %877 = vmatpush1.bf16.msra.mxu0 %v2079_v61  ;;  %918 = vmatpush1.bf16.msra.mxu1 %v2082_v62 }
  0x85   :  { %878 = vmatprep.subr.bf16.mxu0 %v2087_v63  ;;  %919 = vmatprep.subr.bf16.mxu1 %v2090_v1 }
  0x88   :  { %879 = vmatpush1.bf16.msra.mxu0 %v2085_v0  ;;  %920 = vmatpush1.bf16.msra.mxu1 %v2088_v2 }
  0x89   :  { %880 = vmatprep.subr.bf16.mxu0 %v2093_v3  ;;  %921 = vmatprep.subr.bf16.mxu1 %v2096_v4 }
  0x8c   :  { %881 = vmatpush2.bf16.msra.mxu0 %v2091_v5  ;;  %922 = vmatpush2.bf16.msra.mxu1 %v2094_v6  ;;  %v171_v5 = vrot.slane %v2549_v40, %v170_v56  ;;  %v2175_v56 = vld [vmem:[#allocation10 + $0x10] ss:$8 sps:$4 sm:$0xff]  }
  0x8d   :  { %882 = vmatprep.subr.bf16.mxu0 %v2099_v7  ;;  %923 = vmatprep.subr.bf16.mxu1 %v2102_v8  ;;  %v2139_v8 = vld [vmem:[#allocation10 + $0x70] ss:$8 sps:$4 sm:$0xff]  }
  0x90   :  { %883 = vmatpush2.bf16.msra.mxu0 %v2097_v9  ;;  %924 = vmatpush2.bf16.msra.mxu1 %v2100_v10  ;;  %v179_v10 = vrot.slane %v2549_v40, %v178_v60  ;;  %v2181_v60 = vld [vmem:[#allocation10] ss:$8 sps:$4 sm:$0xff]  }
  0x91   :  { %884 = vmatprep.subr.bf16.mxu0 %v2105_v11  ;;  %925 = vmatprep.subr.bf16.mxu1 %v2108_v12 }
  0x94   :  { %885 = vmatpush2.bf16.msra.mxu0 %v2103_v13  ;;  %926 = vmatpush2.bf16.msra.mxu1 %v2106_v14  ;;  %v2142_v13 = vld [vmem:[#allocation10 + $0x170] ss:$8 sps:$4 sm:$0xff]   ;;  %v2147_v14 = vld [vmem:[#allocation10 + $0x64] ss:$8 sps:$4 sm:$0xff]  }
  0x95   :  { %886 = vmatprep.subr.bf16.mxu0 %v2111_v15  ;;  %927 = vmatprep.subr.bf16.mxu1 %v2114_v16 }
  0x98   :  { %887 = vmatpush2.bf16.msra.mxu0 %v2109_v17  ;;  %928 = vmatpush2.bf16.msra.mxu1 %v2112_v18  ;;  %v2150_v17 = vld [vmem:[#allocation10 + $0x164] ss:$8 sps:$4 sm:$0xff]  }
  0x99   :  { %888 = vmatprep.subr.bf16.mxu0 %v2117_v19  ;;  %929 = vmatprep.subr.bf16.mxu1 %v2120_v20 }
  0x9c   :  { %889 = vmatpush2.bf16.msra.mxu0 %v2115_v21  ;;  %930 = vmatpush2.bf16.msra.mxu1 %v2118_v22  ;;  %v2145_v21 = vld [vmem:[#allocation10 + $0x60] ss:$8 sps:$4 sm:$0xff]  }
  0x9d   :  { %890 = vmatprep.subr.bf16.mxu0 %v2123_v23  ;;  %931 = vmatprep.subr.bf16.mxu1 %v2126_v24  ;;  %v2148_v22 = vld [vmem:[#allocation10 + $0x160] ss:$8 sps:$4 sm:$0xff]  }
  0xa0   :  { %891 = vmatpush2.bf16.msra.mxu0 %v2121_v25  ;;  %932 = vmatpush2.bf16.msra.mxu1 %v2124_v26  ;;  %v2153_v25 = vld [vmem:[#allocation10 + $0x54] ss:$8 sps:$4 sm:$0xff]  }
  0xa1   :  { %892 = vmatprep.subr.bf16.mxu0 %v2129_v27  ;;  %933 = vmatprep.subr.bf16.mxu1 %v2132_v28  ;;  %v2156_v28 = vld [vmem:[#allocation10 + $0x154] ss:$8 sps:$4 sm:$0xff]  }
  0xa4   :  { %893 = vmatpush2.bf16.msra.mxu0 %v2127_v29  ;;  %934 = vmatpush2.bf16.msra.mxu1 %v2130_v30 }
  0xa5   :  { %894 = vmatprep.subr.bf16.mxu0 %v2135_v31  ;;  %935 = vmatprep.subr.bf16.mxu1 %v2138_v32 }
  0xa8   :  { %895 = vmatpush2.bf16.msra.mxu0 %v2133_v33  ;;  %936 = vmatpush2.bf16.msra.mxu1 %v2136_v34  ;;  %v2151_v33 = vld [vmem:[#allocation10 + $0x50] ss:$8 sps:$4 sm:$0xff]  }
  0xa9   :  { %1350 = vmatprep.subr.bf16.mxu0 %v2141_v35  ;;  %1391 = vmatprep.subr.bf16.mxu1 %v2144_v36  ;;  %v2154_v36 = vld [vmem:[#allocation10 + $0x150] ss:$8 sps:$4 sm:$0xff]  }
 0x123   :  { %v306_v47 = vpop.f32.mrf.mxu0  ;;  %v347_v50 = vpop.f32.mrf.mxu1 }
 0x124   :  { %v307_v49 = vadd.f32 %v306_v47, %v151_v44  ;;  %v348_v51 = vadd.f32 %v347_v50, %v159_v45  ;;  %v2157_v44 = vld [vmem:[#allocation10 + $0x40] ss:$8 sps:$4 sm:$0xff]   ;;  %v2168_v47 = vld [vmem:[#allocation10 + $0x134] ss:$8 sps:$4 sm:$0xff]   ;;  %v2171_v50 = vld [vmem:[#allocation10 + $0x24] ss:$8 sps:$4 sm:$0xff]  }
 0x125   :  { %v308_v52 = vpop.f32.mrf.mxu0  ;;  %v349_v55 = vpop.f32.mrf.mxu1  ;;  %v2160_v45 = vld [vmem:[#allocation10 + $0x140] ss:$8 sps:$4 sm:$0xff]  }
 0x126   :  { %vm436_vm1 = vcmp.gt.f32.partialorder %v307_v49, 0.0  ;;  %v444_v53 = vmul.f32 0.2, %v307_v49  ;;  %v309_v54 = vadd.f32 %v308_v52, %v155_v46  ;;  %vm438_vm2 = vcmp.gt.f32.partialorder %v348_v51, 0.0  ;;  %v2165_v46 = vld [vmem:[#allocation10 + $0x34] ss:$8 sps:$4 sm:$0xff]  }
 0x127   :  { %v446_v57 = vmul.f32 0.2, %v348_v51  ;;  %v350_v58 = vadd.f32 %v349_v55, %v163_v48  ;;  %v310_v59 = vpop.f32.mrf.mxu0  ;;  %v351_v62 = vpop.f32.mrf.mxu1  ;;  %v2163_v48 = vld [vmem:[#allocation10 + $0x30] ss:$8 sps:$4 sm:$0xff]   ;;  %v2169_v52 = vld [vmem:[#allocation10 + $0x20] ss:$8 sps:$4 sm:$0xff]  }
 0x128   :  { %vm437_vm3 = vcmp.gt.f32.partialorder %v309_v54, 0.0  ;;  %v445_v61 = vmul.f32 0.2, %v309_v54  ;;  %v452_v63 = vsel %vm436_vm1, %v307_v49, %v444_v53  ;;  %v2166_v49 = vld [vmem:[#allocation10 + $0x130] ss:$8 sps:$4 sm:$0xff]  }
 0x129   :  { %vm439_vm4 = vcmp.gt.f32.partialorder %v350_v58, 0.0  ;;  %v447_v0 = vmul.f32 0.2, %v350_v58  ;;  %v311_v1 = vpop.f32.mrf.mxu0  ;;  %v454_v2 = vsel %vm438_vm2, %v348_v51, %v446_v57  ;;  %v352_v3 = vpop.f32.mrf.mxu1  ;;  %v460_v11 = vpack.c.bf16 %v452_v63, %v452_v63  ;;  %v2174_v51 = vld [vmem:[#allocation10 + $0x124] ss:$8 sps:$4 sm:$0xff]  }
 0x12a   :  { %v453_v4 = vsel %vm437_vm3, %v309_v54, %v445_v61  ;;  %v462_v16 = vpack.c.bf16 %v454_v2, %v454_v2  ;;  %v2172_v53 = vld [vmem:[#allocation10 + $0x120] ss:$8 sps:$4 sm:$0xff]   ;;  %v2177_v54 = vld [vmem:[#allocation10 + $0x14] ss:$8 sps:$4 sm:$0xff]   ;;  %v2178_v57 = vld [vmem:[#allocation10 + $0x110] ss:$8 sps:$4 sm:$0xff]  }
 0x12b   :  { %v461_v6 = vpack.c.bf16 %v453_v4, %v453_v4  ;;  %v455_v7 = vsel %vm439_vm4, %v350_v58, %v447_v0  ;;  %v2565_v9 = vpop.f32.mrf.mxu0  ;;  %v2568_v15 = vpop.f32.mrf.mxu1  ;;  %v2180_v55 = vld [vmem:[#allocation10 + $0x114] ss:$8 sps:$4 sm:$0xff]   ;;  %v2183_v58 = vld [vmem:[#allocation10 + $0x4] ss:$8 sps:$4 sm:$0xff]   ;;  %v2184_v61 = vld [vmem:[#allocation10 + $0x100] ss:$8 sps:$4 sm:$0xff]  }
 0x12c   :  { %v463_v12 = vpack.c.bf16 %v455_v7, %v455_v7  ;;  %v2186_v59 = vld [vmem:[#allocation10 + $0x104] ss:$8 sps:$4 sm:$0xff]   ;;  %v2189_v62 = vld [vmem:[#allocation10 + $0xf4] ss:$8 sps:$4 sm:$0xff]   ;;  %v2187_v0 = vld [vmem:[#allocation10 + $0xf0] ss:$8 sps:$4 sm:$0xff]  }
 0x12d   :  { %896 = vmatprep.mubr.bf16.mxu0 %v461_v6  ;;  %v390_v18 = vpop.f32.mrf.mxu0  ;;  %v431_v20 = vpop.f32.mrf.mxu1  ;;  %v2192_v63 = vld [vmem:[#allocation10 + $0x1f4] ss:$8 sps:$4 sm:$0xff]   ;;  %v2190_v1 = vld [vmem:[#allocation10 + $0x1f0] ss:$8 sps:$4 sm:$0xff]   ;;  %v2195_v2 = vld [vmem:[#allocation10 + $0xe4] ss:$8 sps:$4 sm:$0xff]  }
 0x12e   :  { %937 = vmatprep.mubr.bf16.mxu1 %v463_v12  ;;  %897 = vmatmul.mubr.bf16.vlgmr.msra.gmra.mxu0 %v460_v11  ;;  %v391_v19 = vadd.f32 %v390_v18, %v171_v5  ;;  %v432_v24 = vadd.f32 %v431_v20, %v179_v10  ;;  %v2198_v3 = vld [vmem:[#allocation10 + $0x1e4] ss:$8 sps:$4 sm:$0xff]   ;;  %v2193_v4 = vld [vmem:[#allocation10 + $0xe0] ss:$8 sps:$4 sm:$0xff]   ;;  %v2201_v6 = vld [vmem:[#allocation10 + $0xd4] ss:$8 sps:$4 sm:$0xff]  }
 0x12f   :  { %938 = vmatmul.mubr.bf16.vlgmr.msra.gmra.mxu1 %v462_v16  ;;  %1351 = vmatpush1.bf16.msra.mxu0 %v2139_v8  ;;  %v392_v23 = vpop.f32.mrf.mxu0  ;;  %v433_v27 = vpop.f32.mrf.mxu1  ;;  %v2196_v5 = vld [vmem:[#allocation10 + $0x1e0] ss:$8 sps:$4 sm:$0xff]   ;;  %v2204_v7 = vld [vmem:[#allocation10 + $0x1d4] ss:$8 sps:$4 sm:$0xff]   ;;  %v2199_v8 = vld [vmem:[#allocation10 + $0xd0] ss:$8 sps:$4 sm:$0xff]  }
 0x130   :  { %1392 = vmatpush1.bf16.msra.mxu1 %v2142_v13  ;;  %1352 = vmatprep.subr.bf16.mxu0 %v2147_v14  ;;  %vm441_vm5 = vcmp.gt.f32.partialorder %v391_v19, 0.0  ;;  %v449_v26 = vmul.f32 0.2, %v391_v19  ;;  %vm443_vm6 = vcmp.gt.f32.partialorder %v432_v24, 0.0  ;;  %v451_v29 = vmul.f32 0.2, %v432_v24 }
 0x131   :  { %1393 = vmatprep.subr.bf16.mxu1 %v2150_v17  ;;  %v393_v30 = vpop.f32.mrf.mxu0  ;;  %v434_v31 = vpop.f32.mrf.mxu1  ;;  %v2202_v10 = vld [vmem:[#allocation10 + $0x1d0] ss:$8 sps:$4 sm:$0xff]   ;;  %v2207_v11 = vld [vmem:[#allocation10 + $0xc4] ss:$8 sps:$4 sm:$0xff]   ;;  %v2205_v13 = vld [vmem:[#allocation10 + $0xc0] ss:$8 sps:$4 sm:$0xff]  }
 0x132   :  { %v457_v32 = vsel %vm441_vm5, %v391_v19, %v449_v26  ;;  %v459_v35 = vsel %vm443_vm6, %v432_v24, %v451_v29  ;;  %v2210_v12 = vld [vmem:[#allocation10 + $0x1c4] ss:$8 sps:$4 sm:$0xff]   ;;  %v2208_v14 = vld [vmem:[#allocation10 + $0x1c0] ss:$8 sps:$4 sm:$0xff]   ;;  %v2213_v16 = vld [vmem:[#allocation10 + $0xb4] ss:$8 sps:$4 sm:$0xff]  }
 0x133   :  { %1353 = vmatpush1.bf16.msra.mxu0 %v2145_v21  ;;  %v465_v34 = vpack.c.bf16 %v457_v32, %v457_v32  ;;  %v467_v41 = vpack.c.bf16 %v459_v35, %v459_v35  ;;  %v166_v17 = vsub.s32 4, %v2544_v38  ;;  %v2216_v18 = vld [vmem:[#allocation10 + $0x1b4] ss:$8 sps:$4 sm:$0xff]   ;;  %v174_v19 = vsub.s32 6, %v2544_v38  ;;  %v2211_v20 = vld [vmem:[#allocation10 + $0xb0] ss:$8 sps:$4 sm:$0xff]  }
 0x134   :  { %1394 = vmatpush1.bf16.msra.mxu1 %v2148_v22  ;;  %1354 = vmatprep.subr.bf16.mxu0 %v2153_v25  ;;  %v2214_v21 = vld [vmem:[#allocation10 + $0x1b0] ss:$8 sps:$4 sm:$0xff]   ;;  %v2219_v22 = vld [vmem:[#allocation10 + $0xa4] ss:$8 sps:$4 sm:$0xff]   ;;  %v2217_v26 = vld [vmem:[#allocation10 + $0xa0] ss:$8 sps:$4 sm:$0xff]  }
 0x135   :  { %1395 = vmatprep.subr.bf16.mxu1 %v2156_v28  ;;  %1382 = vmatprep.mubr.bf16.mxu0 %v465_v34  ;;  %v167_v23 = vrot.slane %v2549_v40, %v166_v17  ;;  %v2222_v24 = vld [vmem:[#allocation10 + $0x1a4] ss:$8 sps:$4 sm:$0xff]   ;;  %v175_v25 = vrot.slane %v2549_v40, %v174_v19  ;;  %v2220_v27 = vld [vmem:[#allocation10 + $0x1a0] ss:$8 sps:$4 sm:$0xff]   ;;  %v2225_v28 = vld [vmem:[#allocation10 + $0x94] ss:$8 sps:$4 sm:$0xff]  }
 0x136   :  { %1423 = vmatprep.mubr.bf16.mxu1 %v467_v41  ;;  %v2228_v29 = vld [vmem:[#allocation10 + $0x194] ss:$8 sps:$4 sm:$0xff]   ;;  %v2223_v31 = vld [vmem:[#allocation10 + $0x90] ss:$8 sps:$4 sm:$0xff]   ;;  %v2234_v40 = vld [vmem:[#allocation10 + $0x184] ss:$8 sps:$4 sm:$0xff]  }
 0x137   :  { %1355 = vmatpush1.bf16.msra.mxu0 %v2151_v33  ;;  %v389_v38 = vadd.f32 %v2565_v9, %v167_v23  ;;  %v430_v30 = vadd.f32 %v2568_v15, %v175_v25  ;;  %v2226_v32 = vld [vmem:[#allocation10 + $0x190] ss:$8 sps:$4 sm:$0xff]   ;;  %v2231_v33 = vld [vmem:[#allocation10 + $0x84] ss:$8 sps:$4 sm:$0xff]   ;;  %v2232_v9 = vld [vmem:[#allocation10 + $0x180] ss:$8 sps:$4 sm:$0xff]  }
 0x138   :  { %1396 = vmatpush1.bf16.msra.mxu1 %v2154_v36  ;;  %1356 = vmatprep.subr.bf16.mxu0 %v2159_v37  ;;  %v2229_v36 = vld [vmem:[#allocation10 + $0x80] ss:$8 sps:$4 sm:$0xff]   ;;  %v2235_v15 = vld [vmem:[#allocation11 + $0x78] sm:$0xff]  }
 0x139   :  { %1397 = vmatprep.subr.bf16.mxu1 %v2162_v43  ;;  %v448_v34 = vmul.f32 0.2, %v389_v38  ;;  %vm440_vm7 = vcmp.gt.f32.partialorder %v389_v38, 0.0  ;;  %v450_v35 = vmul.f32 0.2, %v430_v30  ;;  %vm442_vm8 = vcmp.gt.f32.partialorder %v430_v30, 0.0 }
 0x13b   :  { %1357 = vmatpush1.bf16.msra.mxu0 %v2157_v44  ;;  %v456_v37 = vsel %vm440_vm7, %v389_v38, %v448_v34  ;;  %v458_v41 = vsel %vm442_vm8, %v430_v30, %v450_v35  ;;  %v2236_v44 = vld [vmem:[#allocation11 + $0x38] sm:$0xff]   ;;  %v1018_v34 = vld [vmem:[%s2598_s6] sm:$0x3] }
 0x13c   :  { %1398 = vmatpush1.bf16.msra.mxu1 %v2160_v45  ;;  %1358 = vmatprep.subr.bf16.mxu0 %v2165_v46  ;;  %v464_v43 = vpack.c.bf16 %v456_v37, %v456_v37  ;;  %v466_v45 = vpack.c.bf16 %v458_v41, %v458_v41  ;;  %v2237_v46 = vld [vmem:[#allocation11 + $0x70] sm:$0xff]   ;;  %v1027_v35 = vrot.slane %v1018_v34, %v2553_v42 }
 0x13d   :  { %1399 = vmatprep.subr.bf16.mxu1 %v2168_v47  ;;  %v2238_v47 = vld [vmem:[#allocation11 + $0x30] sm:$0xff]  }
 0x13f   :  { %1359 = vmatpush1.bf16.msra.mxu0 %v2163_v48  ;;  %v2239_v48 = vld [vmem:[#allocation11 + $0x68] sm:$0xff]  }
 0x140   :  { %1400 = vmatpush1.bf16.msra.mxu1 %v2166_v49  ;;  %1360 = vmatprep.subr.bf16.mxu0 %v2171_v50  ;;  %v2240_v49 = vld [vmem:[#allocation11 + $0x28] sm:$0xff]   ;;  %v2241_v50 = vld [vmem:[#allocation11 + $0x60] sm:$0xff]  }
 0x141   :  { %1401 = vmatprep.subr.bf16.mxu1 %v2174_v51  ;;  %v2242_v51 = vld [vmem:[#allocation11 + $0x20] sm:$0xff]  }
 0x143   :  { %1361 = vmatpush1.bf16.msra.mxu0 %v2169_v52  ;;  %v2243_v52 = vld [vmem:[#allocation11 + $0x58] sm:$0xff]  }
 0x144   :  { %1402 = vmatpush1.bf16.msra.mxu1 %v2172_v53  ;;  %1362 = vmatprep.subr.bf16.mxu0 %v2177_v54  ;;  %v2251_v53 = vld [vmem:[#allocation13 + $0x78] sm:$0xff]  }
 0x145   :  { %1403 = vmatprep.subr.bf16.mxu1 %v2180_v55  ;;  %v2252_v54 = vld [vmem:[#allocation13 + $0x38] sm:$0xff]   ;;  %v2253_v55 = vld [vmem:[#allocation13 + $0x70] sm:$0xff]  }
 0x147   :  { %1363 = vmatpush1.bf16.msra.mxu0 %v2175_v56  ;;  %v2244_v56 = vld [vmem:[#allocation11 + $0x18] sm:$0xff]  }
 0x148   :  { %1404 = vmatpush1.bf16.msra.mxu1 %v2178_v57  ;;  %1364 = vmatprep.subr.bf16.mxu0 %v2183_v58  ;;  %v2245_v57 = vld [vmem:[#allocation11 + $0x50] sm:$0xff]  }
 0x149   :  { %1405 = vmatprep.subr.bf16.mxu1 %v2186_v59  ;;  %v2254_v58 = vld [vmem:[#allocation13 + $0x30] sm:$0xff]   ;;  %v2255_v59 = vld [vmem:[#allocation13 + $0x68] sm:$0xff]  }
 0x14b   :  { %1365 = vmatpush1.bf16.msra.mxu0 %v2181_v60  ;;  %v2246_v60 = vld [vmem:[#allocation11 + $0x10] sm:$0xff]  }
 0x14c   :  { %1406 = vmatpush1.bf16.msra.mxu1 %v2184_v61  ;;  %1366 = vmatprep.subr.bf16.mxu0 %v2189_v62  ;;  %v2247_v61 = vld [vmem:[#allocation11 + $0x48] sm:$0xff]  }
 0x14d   :  { %1407 = vmatprep.subr.bf16.mxu1 %v2192_v63  ;;  %v2256_v62 = vld [vmem:[#allocation13 + $0x28] sm:$0xff]   ;;  %v2257_v63 = vld [vmem:[#allocation13 + $0x60] sm:$0xff]  }
 0x14f   :  { %1367 = vmatpush2.bf16.msra.mxu0 %v2187_v0  ;;  %v2248_v0 = vld [vmem:[#allocation11 + $0x8] sm:$0xff]  }
 0x150   :  { %1408 = vmatpush2.bf16.msra.mxu1 %v2190_v1  ;;  %1368 = vmatprep.subr.bf16.mxu0 %v2195_v2  ;;  %v2249_v1 = vld [vmem:[#allocation11 + $0x40] sm:$0xff]  }
 0x151   :  { %1409 = vmatprep.subr.bf16.mxu1 %v2198_v3  ;;  %v2258_v2 = vld [vmem:[#allocation13 + $0x20] sm:$0xff]   ;;  %v2259_v3 = vld [vmem:[#allocation13 + $0x58] sm:$0xff]  }
 0x153   :  { %1369 = vmatpush2.bf16.msra.mxu0 %v2193_v4  ;;  %v2250_v4 = vld [vmem:[#allocation11] sm:$0xff]  }
 0x154   :  { %1410 = vmatpush2.bf16.msra.mxu1 %v2196_v5  ;;  %1370 = vmatprep.subr.bf16.mxu0 %v2201_v6  ;;  %v2260_v5 = vld [vmem:[#allocation13 + $0x18] sm:$0xff]   ;;  %v2261_v6 = vld [vmem:[#allocation13 + $0x50] sm:$0xff]  }
 0x155   :  { %1411 = vmatprep.subr.bf16.mxu1 %v2204_v7  ;;  %v2262_v7 = vld [vmem:[#allocation13 + $0x10] sm:$0xff]  }
 0x157   :  { %1371 = vmatpush2.bf16.msra.mxu0 %v2199_v8  ;;  %v2263_v8 = vld [vmem:[#allocation13 + $0x48] sm:$0xff]  }
 0x158   :  { %1412 = vmatpush2.bf16.msra.mxu1 %v2202_v10  ;;  %1372 = vmatprep.subr.bf16.mxu0 %v2207_v11  ;;  %v2264_v10 = vld [vmem:[#allocation13 + $0x8] sm:$0xff]   ;;  %v2265_v11 = vld [vmem:[#allocation13 + $0x40] sm:$0xff]  }
 0x159   :  { %1413 = vmatprep.subr.bf16.mxu1 %v2210_v12  ;;  %v2266_v12 = vld [vmem:[#allocation13] sm:$0xff]  }
 0x15b   :  { %1373 = vmatpush2.bf16.msra.mxu0 %v2205_v13  ;;  %v532_v13 = vld [vmem:[%s2596_s4] sm:$0x3] }
 0x15c   :  { %1414 = vmatpush2.bf16.msra.mxu1 %v2208_v14  ;;  %1374 = vmatprep.subr.bf16.mxu0 %v2213_v16  ;;  %v537_v14 = vrot.slane %v532_v13, %v2547_v39  ;;  %v541_v16 = vrot.slane %v532_v13, %v2553_v42 }
 0x15d   :  { %1415 = vmatprep.subr.bf16.mxu1 %v2216_v18 }
 0x15f   :  { %1375 = vmatpush2.bf16.msra.mxu0 %v2211_v20 }
 0x160   :  { %1416 = vmatpush2.bf16.msra.mxu1 %v2214_v21  ;;  %1376 = vmatprep.subr.bf16.mxu0 %v2219_v22 }
 0x161   :  { %1417 = vmatprep.subr.bf16.mxu1 %v2222_v24 }
 0x163   :  { %1377 = vmatpush2.bf16.msra.mxu0 %v2217_v26 }
 0x164   :  { %1418 = vmatpush2.bf16.msra.mxu1 %v2220_v27  ;;  %1378 = vmatprep.subr.bf16.mxu0 %v2225_v28 }
 0x165   :  { %1419 = vmatprep.subr.bf16.mxu1 %v2228_v29 }
 0x167   :  { %1379 = vmatpush2.bf16.msra.mxu0 %v2223_v31 }
 0x168   :  { %1420 = vmatpush2.bf16.msra.mxu1 %v2226_v32  ;;  %1380 = vmatprep.subr.bf16.mxu0 %v2231_v33 }
 0x169   :  { %1421 = vmatprep.subr.bf16.mxu1 %v2234_v40  ;;  %v1023_v40 = vrot.slane %v1018_v34, %v2547_v39 }
 0x16b   :  { %1381 = vmatpush2.bf16.msra.mxu0 %v2229_v36 }
 0x16c   :  { %1422 = vmatpush2.bf16.msra.mxu1 %v2232_v9  ;;  %1984 = vmatprep.subr.bf16.mxu0 %v2251_v53 }
 0x16d   :  { %2006 = vmatprep.subr.bf16.mxu1 %v2235_v15 }
 0x16e   :  { %1383 = vmatmul.mubr.bf16.vlgmr.msra.gmra.mxu0 %v464_v43 }
 0x16f   :  { %1424 = vmatmul.mubr.bf16.vlgmr.msra.gmra.mxu1 %v466_v45  ;;  %1985 = vmatpush3.bf16.msra.mxu0 %v2252_v54 }
 0x170   :  { %2007 = vmatpush3.bf16.msra.mxu1 %v2236_v44  ;;  %1986 = vmatprep.subr.bf16.mxu0 %v2253_v55 }
 0x171   :  { %2008 = vmatprep.subr.bf16.mxu1 %v2237_v46 }
 0x173   :  { %1987 = vmatpush3.bf16.msra.mxu0 %v2254_v58 }
 0x174   :  { %2009 = vmatpush3.bf16.msra.mxu1 %v2238_v47  ;;  %1988 = vmatprep.subr.bf16.mxu0 %v2255_v59 }
 0x175   :  { %2010 = vmatprep.subr.bf16.mxu1 %v2239_v48 }
 0x177   :  { %1989 = vmatpush3.bf16.msra.mxu0 %v2256_v62 }
 0x178   :  { %2011 = vmatpush3.bf16.msra.mxu1 %v2240_v49  ;;  %1990 = vmatprep.subr.bf16.mxu0 %v2257_v63  ;;  %v1983_v63 = vld [vmem:[%s2601_s9] ss:$0 sm:$0xff] }
 0x179   :  { %2012 = vmatprep.subr.bf16.mxu1 %v2241_v50 }
 0x17b   :  { %1991 = vmatpush3.bf16.msra.mxu0 %v2258_v2 }
 0x17c   :  { %2013 = vmatpush3.bf16.msra.mxu1 %v2242_v51  ;;  %1992 = vmatprep.subr.bf16.mxu0 %v2259_v3 }
 0x17d   :  { %2014 = vmatprep.subr.bf16.mxu1 %v2243_v52 }
 0x17f   :  { %1993 = vmatpush3.bf16.msra.mxu0 %v2260_v5 }
 0x180   :  { %2015 = vmatpush3.bf16.msra.mxu1 %v2244_v56  ;;  %1994 = vmatprep.subr.bf16.mxu0 %v2261_v6 }
 0x181   :  { %2016 = vmatprep.subr.bf16.mxu1 %v2245_v57 }
 0x183   :  { %1995 = vmatpush3.bf16.msra.mxu0 %v2262_v7 }
 0x184   :  { %2017 = vmatpush3.bf16.msra.mxu1 %v2246_v60  ;;  %1996 = vmatprep.subr.bf16.mxu0 %v2263_v8 }
 0x185   :  { %2018 = vmatprep.subr.bf16.mxu1 %v2247_v61 }
 0x187   :  { %1997 = vmatpush3.bf16.msra.mxu0 %v2264_v10 }
 0x188   :  { %2019 = vmatpush3.bf16.msra.mxu1 %v2248_v0  ;;  %1998 = vmatprep.subr.bf16.mxu0 %v2265_v11 }
 0x189   :  { %2020 = vmatprep.subr.bf16.mxu1 %v2249_v1 }
 0x18b   :  { %1999 = vmatpush3.bf16.msra.mxu0 %v2266_v12 }
 0x18c   :  { %2021 = vmatpush3.bf16.msra.mxu1 %v2250_v4 }
 0x1ee   :  { %v898_v17 = vpop.f32.mrf.mxu0 }
 0x1ef   :  { %v899_v18 = vadd.f32 %v898_v17, %v537_v14  ;;  %v939_v19 = vpop.f32.mrf.mxu1 }
 0x1f0   :  { %v900_v20 = vpop.f32.mrf.mxu0 }
 0x1f1   :  { %v940_v21 = vadd.f32 %v939_v19, %v899_v18  ;;  %v901_v22 = vadd.f32 %v900_v20, %v541_v16  ;;  %v941_v23 = vpop.f32.mrf.mxu1 }
 0x1f2   :  { %v902_v24 = vpop.f32.mrf.mxu0 }
 0x1f3   :  { %vm946_vm9 = vcmp.gt.f32.partialorder %v940_v21, 0.0  ;;  %v948_v25 = vmul.f32 0.2, %v940_v21  ;;  %v942_v26 = vadd.f32 %v941_v23, %v901_v22  ;;  %v943_v27 = vpop.f32.mrf.mxu1 }
 0x1f4   :  { %v903_v28 = vpop.f32.mrf.mxu0 }
 0x1f5   :  { %vm947_vm10 = vcmp.gt.f32.partialorder %v942_v26, 0.0  ;;  %v949_v38 = vmul.f32 0.2, %v942_v26  ;;  %v944_v29 = vpop.f32.mrf.mxu1  ;;  %v950_v30 = vsel %vm946_vm9, %v940_v21, %v948_v25 }
 0x1f6   :  { %v952_v33 = vpack.c.bf16 %v950_v30, %v950_v30 }
 0x1f7   :  { %v951_v31 = vsel %vm947_vm10, %v942_v26, %v949_v38 }
 0x1f8   :  { %v953_v32 = vpack.c.bf16 %v951_v31, %v951_v31 }
 0x1fa   :  { %1768 = vmatprep.mubr.bf16.mxu1 %v953_v32 }
 0x1fb   :  { %1769 = vmatmul.mubr.bf16.vlgmr.msra.gmra.mxu1 %v952_v33 }
 0x22e   :  { %v1384_v36 = vpop.f32.mrf.mxu0 }
 0x22f   :  { %v1385_v9 = vadd.f32 %v1384_v36, %v1023_v40  ;;  %v1425_v37 = vpop.f32.mrf.mxu1 }
 0x230   :  { %v1386_v15 = vpop.f32.mrf.mxu0 }
 0x231   :  { %v1426_v41 = vadd.f32 %v1425_v37, %v1385_v9  ;;  %v1387_v43 = vadd.f32 %v1386_v15, %v1027_v35  ;;  %v1427_v44 = vpop.f32.mrf.mxu1 }
 0x232   :  { %v1388_v45 = vpop.f32.mrf.mxu0 }
 0x233   :  { %vm1432_vm11 = vcmp.gt.f32.partialorder %v1426_v41, 0.0  ;;  %v1434_v46 = vmul.f32 0.2, %v1426_v41  ;;  %v1428_v47 = vadd.f32 %v1427_v44, %v1387_v43  ;;  %v1429_v48 = vpop.f32.mrf.mxu1 }
 0x234   :  { %v1389_v49 = vpop.f32.mrf.mxu0 }
 0x235   :  { %vm1433_vm12 = vcmp.gt.f32.partialorder %v1428_v47, 0.0  ;;  %v1435_v50 = vmul.f32 0.2, %v1428_v47  ;;  %v1430_v51 = vpop.f32.mrf.mxu1  ;;  %v1436_v52 = vsel %vm1432_vm11, %v1426_v41, %v1434_v46 }
 0x236   :  { %v1438_v42 = vpack.c.bf16 %v1436_v52, %v1436_v52 }
 0x237   :  { %v1437_v39 = vsel %vm1433_vm12, %v1428_v47, %v1435_v50 }
 0x238   :  { %v1439_v53 = vpack.c.bf16 %v1437_v39, %v1437_v39 }
 0x23a   :  { %1632 = vmatprep.mubr.bf16.mxu0 %v1439_v53 }
 0x23b   :  { %1633 = vmatmul.mubr.bf16.vlgmr.msra.gmra.mxu0 %v1438_v42 }
 0x2bb   :  { %v2022_v54 = vpop.f32.mrf.mxu1 }
 0x2bd   :  { %v2023_v55 = vpop.f32.mrf.mxu1 }
 0x2be   :  { %v2024_v56 = vadd.f32 %v2023_v55, %v2022_v54 }
 0x2bf   :  { %v2025_v57 = vpop.f32.mrf.mxu1 }
 0x2c1   :  { %v2026_v58 = vpop.f32.mrf.mxu1 }
 0x2fb   :  { %v2000_v59 = vpop.f32.mrf.mxu0 }
 0x2fd   :  { %v2001_v60 = vpop.f32.mrf.mxu0 }
 0x2fe   :  { %v2002_v61 = vadd.f32 %v2001_v60, %v2000_v59 }
 0x2ff   :  { %v2003_v62 = vpop.f32.mrf.mxu0 }
 0x300   :  { %v1771_v0 = vadd.f32 %v2024_v56, %v2002_v61 }
 0x301   :  { %v2004_v1 = vpop.f32.mrf.mxu0 }
 0x302   :  { %v1783_v2 = vadd.f32 %v1983_v63, %v1771_v0 }
 0x304   :  { %1784 = vst [vmem:[#allocation14] sm:$0xff] %v1783_v2 }
 0x305   :  { %2418 = shalt.err (!%p2415_p11)
}
 0x306   :  { %1794 = dma.vmem_to_hbm [thread:$0]  %s1792_s30, 128, %s2602_s10, [#allocation4]  }
 0x307   :  { %2435 = dma.done.wait [#allocation4], 128  }
 0x308   :  { %2436 = vsyncadd [#allocation4], 4294967168 }
 0x309   :  { %1798 = vsyncpa [#allocation3], 1 }
 0x30a   :  { %1799 = vsyncpa [#allocation6], 1 }
 0x30b   :  { %1800 = vsyncpa [#allocation9], 1 }
 0x30c   :  { %1801 = vsyncpa [#allocation12], 1 }
 0x30d   :  { %1802 = vsyncpa [#allocation4], 1 }

</bundles_post_ra>
